<compile_context>
chip_gen: v7x
topology: tpu7x:2x2x1
jax: 0.10.0
libtpu: 0.0.40
codegen_flags: <defaults>
</compile_context>

<pallas_src>
import functools

import jax
import jax.numpy as jnp
from jax import lax
from jax.experimental import pallas as pl
from jax.experimental.pallas import tpu as pltpu


# ----------------------------- kernel -------------------------------------- #

def _mha_fused_kernel(x_ref, wqkv_ref, wproj_ref, bproj_ref, o_ref,
                      *, num_heads, head_size):
    """Fused multi-head causal attention + output projection for one batch row.

    x_ref    : (1, T, C)      input row
    wqkv_ref : (C, 3*H*hs)    fused QKV weights, columns = [Q heads | K heads | V heads]
    wproj_ref: (H*hs, C)      output projection weight (transposed: y @ W)
    bproj_ref: (1, C)         output projection bias
    o_ref    : (1, T, C)      output row (lane-dense store)
    """
    x = x_ref[0]                                   # (T, C)
    T = x.shape[0]
    D = num_heads * head_size
    scale = head_size ** (-0.5)

    # One wide QKV matmul on the MXU: (T, C) @ (C, 3D) -> (T, 3D)
    qkv = jnp.dot(x, wqkv_ref[...], preferred_element_type=jnp.float32)
    q_all = qkv[:, 0 * D:1 * D]                    # (T, D)
    k_all = qkv[:, 1 * D:2 * D]
    v_all = qkv[:, 2 * D:3 * D]

    # Causal mask (shared across heads).
    row = lax.broadcasted_iota(jnp.int32, (T, T), 0)
    col = lax.broadcasted_iota(jnp.int32, (T, T), 1)
    causal = col <= row

    # Statically unrolled loop over heads (H is small; all weights are resident).
    head_outs = []
    for h in range(num_heads):
        lo, hi = h * head_size, (h + 1) * head_size
        q = q_all[:, lo:hi]                        # (T, hs)
        k = k_all[:, lo:hi]
        v = v_all[:, lo:hi]

        # q @ k^T without materializing a transposed copy of k.
        wei = lax.dot_general(
            q, k, (((1,), (1,)), ((), ())),
            preferred_element_type=jnp.float32) * scale      # (T, T)
        wei = jnp.where(causal, wei, -jnp.inf)

        wei = wei - jnp.max(wei, axis=-1, keepdims=True)
        p = jnp.exp(wei)
        denom = jnp.sum(p, axis=-1, keepdims=True)
        p = p * pl.reciprocal(denom, approx=True)            # EUP vrcp

        head_outs.append(
            jnp.dot(p, v, preferred_element_type=jnp.float32))  # (T, hs)

    y = jnp.concatenate(head_outs, axis=-1)        # (T, D)

    # Fused output projection: (T, D) @ (D, C) + bias
    out = jnp.dot(y, wproj_ref[...], preferred_element_type=jnp.float32)
    out = out + bproj_ref[...]
    o_ref[0] = out.astype(o_ref.dtype)


# ----------------------------- wrapper -------------------------------------- #

@jax.jit
def multi_head_attention(x, wq, wk, wv, w_proj, b_proj):
    """x: (B, T, C); wq/wk/wv: (H, C, hs); w_proj: (H*hs, C); b_proj: (1, C)."""
    B, T, C = x.shape
    H, _, hs = wq.shape
    D = H * hs

    # Fuse the per-head QKV weights into a single (C, 3D) matrix so the kernel
    # issues one wide matmul.  Column block h of the Q (resp. K, V) section is
    # exactly wq[h] (resp. wk[h], wv[h]).
    wqkv = jnp.concatenate(
        [wq.transpose(1, 0, 2).reshape(C, D),
         wk.transpose(1, 0, 2).reshape(C, D),
         wv.transpose(1, 0, 2).reshape(C, D)],
        axis=-1)                                   # (C, 3D)

    kernel = functools.partial(_mha_fused_kernel, num_heads=H, head_size=hs)

    out = pl.pallas_call(
        kernel,
        out_shape=jax.ShapeDtypeStruct((B, T, C), x.dtype),
        grid=(B,),
        in_specs=[
            pl.BlockSpec((1, T, C), lambda b: (b, 0, 0)),      # x row
            pl.BlockSpec((C, 3 * D), lambda b: (0, 0)),        # fused QKV (resident)
            pl.BlockSpec((D, C), lambda b: (0, 0)),            # proj weight (resident)
            pl.BlockSpec((1, C), lambda b: (0, 0)),            # proj bias (resident)
        ],
        out_specs=pl.BlockSpec((1, T, C), lambda b: (b, 0, 0)),
        compiler_params=pltpu.CompilerParams(
            dimension_semantics=("parallel",)),    # shards across TCs on v7x
    )(x, wqkv, w_proj, b_proj)

    return out


# ----------------------------- reference ------------------------------------ #

def reference(x, wq, wk, wv, w_proj, b_proj):
    B, T, C = x.shape
    H, _, hs = wq.shape
    outs = []
    for h in range(H):
        q = x @ wq[h]
        k = x @ wk[h]
        v = x @ wv[h]
        wei = (q @ jnp.swapaxes(k, -1, -2)) * (hs ** -0.5)
        mask = jnp.tril(jnp.ones((T, T), dtype=bool))
        wei = jnp.where(mask, wei, -jnp.inf)
        wei = jax.nn.softmax(wei, axis=-1)
        outs.append(wei @ v)
    y = jnp.concatenate(outs, axis=-1)
    return y @ w_proj + b_proj[0]


# ----------------------------- main ------------------------------------------ #

if __name__ == "__main__":
    # Small-shape configuration consistent with the module's forward
    # (T <= block_size, n_embd = num_heads * head_size).
    B, T = 2, 64
    n_embd = 128
    num_heads = 4
    head_size = n_embd // num_heads   # 32

    key = jax.random.PRNGKey(0)
    kx, kq, kk, kv, kp, kb = jax.random.split(key, 6)

    # nn.Linear(n_embd, head_size, bias=False): weight (hs, C); we store the
    # transpose (C, hs) per head so the kernel computes x @ W.
    bound_qkv = 1.0 / (n_embd ** 0.5)
    wq = jax.random.uniform(kq, (num_heads, n_embd, head_size),
                            jnp.float32, -bound_qkv, bound_qkv)
    wk = jax.random.uniform(kk, (num_heads, n_embd, head_size),
                            jnp.float32, -bound_qkv, bound_qkv)
    wv = jax.random.uniform(kv, (num_heads, n_embd, head_size),
                            jnp.float32, -bound_qkv, bound_qkv)

    # nn.Linear(H*hs, n_embd): weight (C, D), bias (C,); store transpose (D, C).
    D = num_heads * head_size
    bound_p = 1.0 / (D ** 0.5)
    w_proj = jax.random.uniform(kp, (D, n_embd), jnp.float32, -bound_p, bound_p)
    b_proj = jax.random.uniform(kb, (1, n_embd), jnp.float32, -bound_p, bound_p)

    x = jax.random.normal(kx, (B, T, n_embd), jnp.float32)

    out = multi_head_attention(x, wq, wk, wv, w_proj, b_proj)
    out = jax.block_until_ready(out)

    ref = reference(x, wq, wk, wv, w_proj, b_proj)
    assert out.shape == (B, T, n_embd)
    assert jnp.allclose(out, ref, atol=1e-3, rtol=1e-3), "mismatch vs reference"

    print("KERNEL_OK")
</pallas_src>

<mosaic_0001>
module attributes {stable_mosaic.version = 11 : i64} {
  func.func @_mha_fused_kernel(%arg0: i32, %arg1: memref<1x64x128xf32, #tpu.memory_space<vmem>>, %arg2: memref<128x384xf32, #tpu.memory_space<vmem>>, %arg3: memref<128x128xf32, #tpu.memory_space<vmem>>, %arg4: memref<1x128xf32, #tpu.memory_space<vmem>>, %arg5: memref<1x64x128xf32, #tpu.memory_space<vmem>>) attributes {dimension_semantics = [#tpu.dimension_semantics<parallel>], iteration_bounds = array<i64: 2>, scalar_prefetch = 0 : i64, scratch_operands = 0 : i64, tpu.core_type = #tpu.core_type<tc>, window_params = [{transform_indices = @transform_0, window_bounds = array<i64: 1, 64, 128>}, {pipeline_mode = #tpu.pipeline_mode<synchronous>, transform_indices = @transform_1, window_bounds = array<i64: 128, 384>}, {pipeline_mode = #tpu.pipeline_mode<synchronous>, transform_indices = @transform_2, window_bounds = array<i64: 128, 128>}, {pipeline_mode = #tpu.pipeline_mode<synchronous>, transform_indices = @transform_3, window_bounds = array<i64: 1, 128>}, {transform_indices = @transform_4, window_bounds = array<i64: 1, 64, 128>}]} {
    %c0 = arith.constant 0 : index
    %c0_0 = arith.constant 0 : index
    %c0_1 = arith.constant 0 : index
    %0 = vector.load %arg1[%c0, %c0_0, %c0_1] : memref<1x64x128xf32, #tpu.memory_space<vmem>>, vector<1x64x128xf32>
    %1 = vector.shape_cast %0 : vector<1x64x128xf32> to vector<64x128xf32>
    %c0_2 = arith.constant 0 : index
    %c0_3 = arith.constant 0 : index
    %2 = vector.load %arg2[%c0_2, %c0_3] : memref<128x384xf32, #tpu.memory_space<vmem>>, vector<128x384xf32>
    %cst = arith.constant dense<0.000000e+00> : vector<64x384xf32>
    %3 = tpu.matmul %1, %2, %cst {dimension_numbers = #tpu.dot_dimension_numbers<[1], [0], [0], [1], [0, 0, 1, 1], [], []>} : vector<64x128xf32>, vector<128x384xf32>, vector<64x384xf32> -> vector<64x384xf32>
    %4 = vector.extract_strided_slice %3 {offsets = [0, 0], sizes = [64, 128], strides = [1, 1]} : vector<64x384xf32> to vector<64x128xf32>
    %5 = vector.extract_strided_slice %3 {offsets = [0, 128], sizes = [64, 128], strides = [1, 1]} : vector<64x384xf32> to vector<64x128xf32>
    %6 = vector.extract_strided_slice %3 {offsets = [0, 256], sizes = [64, 128], strides = [1, 1]} : vector<64x384xf32> to vector<64x128xf32>
    %7 = tpu.iota {dimensions = array<i32: 0>} : vector<64x64xi32>
    %8 = tpu.iota {dimensions = array<i32: 1>} : vector<64x64xi32>
    %9 = arith.cmpi sle, %8, %7 : vector<64x64xi32>
    %10 = vector.extract_strided_slice %4 {offsets = [0, 0], sizes = [64, 32], strides = [1, 1]} : vector<64x128xf32> to vector<64x32xf32>
    %11 = vector.extract_strided_slice %5 {offsets = [0, 0], sizes = [64, 32], strides = [1, 1]} : vector<64x128xf32> to vector<64x32xf32>
    %12 = vector.extract_strided_slice %6 {offsets = [0, 0], sizes = [64, 32], strides = [1, 1]} : vector<64x128xf32> to vector<64x32xf32>
    %cst_4 = arith.constant dense<0.000000e+00> : vector<64x64xf32>
    %13 = tpu.matmul %10, %11, %cst_4 {dimension_numbers = #tpu.dot_dimension_numbers<[1], [1], [0], [0], [0, 0, 1, 0], [], []>} : vector<64x32xf32>, vector<64x32xf32>, vector<64x64xf32> -> vector<64x64xf32>
    %cst_5 = arith.constant 0.176776692 : f32
    %14 = vector.broadcast %cst_5 : f32 to vector<64x64xf32>
    %15 = arith.mulf %13, %14 : vector<64x64xf32>
    %cst_6 = arith.constant 0xFF800000 : f32
    %16 = vector.broadcast %cst_6 : f32 to vector<64x64xf32>
    %17 = arith.select %9, %15, %16 : vector<64x64xi1>, vector<64x64xf32>
    %cst_7 = arith.constant dense<0xFF800000> : vector<64xf32>
    %18 = vector.multi_reduction <maximumf>, %17, %cst_7 [1] : vector<64x64xf32> to vector<64xf32>
    %19 = vector.shape_cast %18 : vector<64xf32> to vector<64x1xf32>
    %20 = vector.broadcast %19 : vector<64x1xf32> to vector<64x64xf32>
    %21 = arith.subf %17, %20 : vector<64x64xf32>
    %22 = math.exp %21 : vector<64x64xf32>
    %cst_8 = arith.constant dense<0.000000e+00> : vector<64xf32>
    %23 = vector.multi_reduction <add>, %22, %cst_8 [1] : vector<64x64xf32> to vector<64xf32>
    %24 = vector.shape_cast %23 : vector<64xf32> to vector<64x1xf32>
    %25 = tpu.reciprocal %24 {approx = true} : vector<64x1xf32> -> vector<64x1xf32>
    %26 = vector.broadcast %25 : vector<64x1xf32> to vector<64x64xf32>
    %27 = arith.mulf %22, %26 : vector<64x64xf32>
    %cst_9 = arith.constant dense<0.000000e+00> : vector<64x32xf32>
    %28 = tpu.matmul %27, %12, %cst_9 {dimension_numbers = #tpu.dot_dimension_numbers<[1], [0], [0], [1], [0, 0, 1, 1], [], []>} : vector<64x64xf32>, vector<64x32xf32>, vector<64x32xf32> -> vector<64x32xf32>
    %29 = vector.extract_strided_slice %4 {offsets = [0, 32], sizes = [64, 32], strides = [1, 1]} : vector<64x128xf32> to vector<64x32xf32>
    %30 = vector.extract_strided_slice %5 {offsets = [0, 32], sizes = [64, 32], strides = [1, 1]} : vector<64x128xf32> to vector<64x32xf32>
    %31 = vector.extract_strided_slice %6 {offsets = [0, 32], sizes = [64, 32], strides = [1, 1]} : vector<64x128xf32> to vector<64x32xf32>
    %cst_10 = arith.constant dense<0.000000e+00> : vector<64x64xf32>
    %32 = tpu.matmul %29, %30, %cst_10 {dimension_numbers = #tpu.dot_dimension_numbers<[1], [1], [0], [0], [0, 0, 1, 0], [], []>} : vector<64x32xf32>, vector<64x32xf32>, vector<64x64xf32> -> vector<64x64xf32>
    %cst_11 = arith.constant 0.176776692 : f32
    %33 = vector.broadcast %cst_11 : f32 to vector<64x64xf32>
    %34 = arith.mulf %32, %33 : vector<64x64xf32>
    %cst_12 = arith.constant 0xFF800000 : f32
    %35 = vector.broadcast %cst_12 : f32 to vector<64x64xf32>
    %36 = arith.select %9, %34, %35 : vector<64x64xi1>, vector<64x64xf32>
    %cst_13 = arith.constant dense<0xFF800000> : vector<64xf32>
    %37 = vector.multi_reduction <maximumf>, %36, %cst_13 [1] : vector<64x64xf32> to vector<64xf32>
    %38 = vector.shape_cast %37 : vector<64xf32> to vector<64x1xf32>
    %39 = vector.broadcast %38 : vector<64x1xf32> to vector<64x64xf32>
    %40 = arith.subf %36, %39 : vector<64x64xf32>
    %41 = math.exp %40 : vector<64x64xf32>
    %cst_14 = arith.constant dense<0.000000e+00> : vector<64xf32>
    %42 = vector.multi_reduction <add>, %41, %cst_14 [1] : vector<64x64xf32> to vector<64xf32>
    %43 = vector.shape_cast %42 : vector<64xf32> to vector<64x1xf32>
    %44 = tpu.reciprocal %43 {approx = true} : vector<64x1xf32> -> vector<64x1xf32>
    %45 = vector.broadcast %44 : vector<64x1xf32> to vector<64x64xf32>
    %46 = arith.mulf %41, %45 : vector<64x64xf32>
    %cst_15 = arith.constant dense<0.000000e+00> : vector<64x32xf32>
    %47 = tpu.matmul %46, %31, %cst_15 {dimension_numbers = #tpu.dot_dimension_numbers<[1], [0], [0], [1], [0, 0, 1, 1], [], []>} : vector<64x64xf32>, vector<64x32xf32>, vector<64x32xf32> -> vector<64x32xf32>
    %48 = vector.extract_strided_slice %4 {offsets = [0, 64], sizes = [64, 32], strides = [1, 1]} : vector<64x128xf32> to vector<64x32xf32>
    %49 = vector.extract_strided_slice %5 {offsets = [0, 64], sizes = [64, 32], strides = [1, 1]} : vector<64x128xf32> to vector<64x32xf32>
    %50 = vector.extract_strided_slice %6 {offsets = [0, 64], sizes = [64, 32], strides = [1, 1]} : vector<64x128xf32> to vector<64x32xf32>
    %cst_16 = arith.constant dense<0.000000e+00> : vector<64x64xf32>
    %51 = tpu.matmul %48, %49, %cst_16 {dimension_numbers = #tpu.dot_dimension_numbers<[1], [1], [0], [0], [0, 0, 1, 0], [], []>} : vector<64x32xf32>, vector<64x32xf32>, vector<64x64xf32> -> vector<64x64xf32>
    %cst_17 = arith.constant 0.176776692 : f32
    %52 = vector.broadcast %cst_17 : f32 to vector<64x64xf32>
    %53 = arith.mulf %51, %52 : vector<64x64xf32>
    %cst_18 = arith.constant 0xFF800000 : f32
    %54 = vector.broadcast %cst_18 : f32 to vector<64x64xf32>
    %55 = arith.select %9, %53, %54 : vector<64x64xi1>, vector<64x64xf32>
    %cst_19 = arith.constant dense<0xFF800000> : vector<64xf32>
    %56 = vector.multi_reduction <maximumf>, %55, %cst_19 [1] : vector<64x64xf32> to vector<64xf32>
    %57 = vector.shape_cast %56 : vector<64xf32> to vector<64x1xf32>
    %58 = vector.broadcast %57 : vector<64x1xf32> to vector<64x64xf32>
    %59 = arith.subf %55, %58 : vector<64x64xf32>
    %60 = math.exp %59 : vector<64x64xf32>
    %cst_20 = arith.constant dense<0.000000e+00> : vector<64xf32>
    %61 = vector.multi_reduction <add>, %60, %cst_20 [1] : vector<64x64xf32> to vector<64xf32>
    %62 = vector.shape_cast %61 : vector<64xf32> to vector<64x1xf32>
    %63 = tpu.reciprocal %62 {approx = true} : vector<64x1xf32> -> vector<64x1xf32>
    %64 = vector.broadcast %63 : vector<64x1xf32> to vector<64x64xf32>
    %65 = arith.mulf %60, %64 : vector<64x64xf32>
    %cst_21 = arith.constant dense<0.000000e+00> : vector<64x32xf32>
    %66 = tpu.matmul %65, %50, %cst_21 {dimension_numbers = #tpu.dot_dimension_numbers<[1], [0], [0], [1], [0, 0, 1, 1], [], []>} : vector<64x64xf32>, vector<64x32xf32>, vector<64x32xf32> -> vector<64x32xf32>
    %67 = vector.extract_strided_slice %4 {offsets = [0, 96], sizes = [64, 32], strides = [1, 1]} : vector<64x128xf32> to vector<64x32xf32>
    %68 = vector.extract_strided_slice %5 {offsets = [0, 96], sizes = [64, 32], strides = [1, 1]} : vector<64x128xf32> to vector<64x32xf32>
    %69 = vector.extract_strided_slice %6 {offsets = [0, 96], sizes = [64, 32], strides = [1, 1]} : vector<64x128xf32> to vector<64x32xf32>
    %cst_22 = arith.constant dense<0.000000e+00> : vector<64x64xf32>
    %70 = tpu.matmul %67, %68, %cst_22 {dimension_numbers = #tpu.dot_dimension_numbers<[1], [1], [0], [0], [0, 0, 1, 0], [], []>} : vector<64x32xf32>, vector<64x32xf32>, vector<64x64xf32> -> vector<64x64xf32>
    %cst_23 = arith.constant 0.176776692 : f32
    %71 = vector.broadcast %cst_23 : f32 to vector<64x64xf32>
    %72 = arith.mulf %70, %71 : vector<64x64xf32>
    %cst_24 = arith.constant 0xFF800000 : f32
    %73 = vector.broadcast %cst_24 : f32 to vector<64x64xf32>
    %74 = arith.select %9, %72, %73 : vector<64x64xi1>, vector<64x64xf32>
    %cst_25 = arith.constant dense<0xFF800000> : vector<64xf32>
    %75 = vector.multi_reduction <maximumf>, %74, %cst_25 [1] : vector<64x64xf32> to vector<64xf32>
    %76 = vector.shape_cast %75 : vector<64xf32> to vector<64x1xf32>
    %77 = vector.broadcast %76 : vector<64x1xf32> to vector<64x64xf32>
    %78 = arith.subf %74, %77 : vector<64x64xf32>
    %79 = math.exp %78 : vector<64x64xf32>
    %cst_26 = arith.constant dense<0.000000e+00> : vector<64xf32>
    %80 = vector.multi_reduction <add>, %79, %cst_26 [1] : vector<64x64xf32> to vector<64xf32>
    %81 = vector.shape_cast %80 : vector<64xf32> to vector<64x1xf32>
    %82 = tpu.reciprocal %81 {approx = true} : vector<64x1xf32> -> vector<64x1xf32>
    %83 = vector.broadcast %82 : vector<64x1xf32> to vector<64x64xf32>
    %84 = arith.mulf %79, %83 : vector<64x64xf32>
    %cst_27 = arith.constant dense<0.000000e+00> : vector<64x32xf32>
    %85 = tpu.matmul %84, %69, %cst_27 {dimension_numbers = #tpu.dot_dimension_numbers<[1], [0], [0], [1], [0, 0, 1, 1], [], []>} : vector<64x64xf32>, vector<64x32xf32>, vector<64x32xf32> -> vector<64x32xf32>
    %86 = tpu.concatenate %28, %47, %66, %85 in 1 : vector<64x32xf32>, vector<64x32xf32>, vector<64x32xf32>, vector<64x32xf32> -> vector<64x128xf32>
    %c0_28 = arith.constant 0 : index
    %c0_29 = arith.constant 0 : index
    %87 = vector.load %arg3[%c0_28, %c0_29] : memref<128x128xf32, #tpu.memory_space<vmem>>, vector<128x128xf32>
    %cst_30 = arith.constant dense<0.000000e+00> : vector<64x128xf32>
    %88 = tpu.matmul %86, %87, %cst_30 {dimension_numbers = #tpu.dot_dimension_numbers<[1], [0], [0], [1], [0, 0, 1, 1], [], []>} : vector<64x128xf32>, vector<128x128xf32>, vector<64x128xf32> -> vector<64x128xf32>
    %c0_31 = arith.constant 0 : index
    %c0_32 = arith.constant 0 : index
    %89 = vector.load %arg4[%c0_31, %c0_32] : memref<1x128xf32, #tpu.memory_space<vmem>>, vector<1x128xf32>
    %90 = vector.broadcast %89 : vector<1x128xf32> to vector<64x128xf32>
    %91 = arith.addf %88, %90 : vector<64x128xf32>
    %c0_33 = arith.constant 0 : index
    %c0_34 = arith.constant 0 : index
    %c0_35 = arith.constant 0 : index
    %92 = vector.load %arg5[%c0_33, %c0_34, %c0_35] : memref<1x64x128xf32, #tpu.memory_space<vmem>>, vector<1x64x128xf32>
    %93 = vector.shape_cast %92 : vector<1x64x128xf32> to vector<64x128xf32>
    %94 = vector.shape_cast %91 : vector<64x128xf32> to vector<1x64x128xf32>
    tpu.vector_store %arg5[%c0_33, %c0_34, %c0_35], %94 {strides = array<i32>} : memref<1x64x128xf32, #tpu.memory_space<vmem>>, vector<1x64x128xf32>,
    return
  }
  func.func @transform_0(%arg0: i32) -> (i32, i32, i32) {
    %c0_i32 = arith.constant 0 : i32
    %c0_i32_0 = arith.constant 0 : i32
    %c0_i32_1 = arith.constant 0 : i32
    return %arg0, %c0_i32, %c0_i32_0 : i32, i32, i32
  }
  func.func @transform_1(%arg0: i32) -> (i32, i32) {
    %c0_i32 = arith.constant 0 : i32
    %c0_i32_0 = arith.constant 0 : i32
    %c0_i32_1 = arith.constant 0 : i32
    return %c0_i32, %c0_i32_0 : i32, i32
  }
  func.func @transform_2(%arg0: i32) -> (i32, i32) {
    %c0_i32 = arith.constant 0 : i32
    %c0_i32_0 = arith.constant 0 : i32
    %c0_i32_1 = arith.constant 0 : i32
    return %c0_i32, %c0_i32_0 : i32, i32
  }
  func.func @transform_3(%arg0: i32) -> (i32, i32) {
    %c0_i32 = arith.constant 0 : i32
    %c0_i32_0 = arith.constant 0 : i32
    %c0_i32_1 = arith.constant 0 : i32
    return %c0_i32, %c0_i32_0 : i32, i32
  }
  func.func @transform_4(%arg0: i32) -> (i32, i32, i32) {
    %c0_i32 = arith.constant 0 : i32
    %c0_i32_0 = arith.constant 0 : i32
    %c0_i32_1 = arith.constant 0 : i32
    return %arg0, %c0_i32, %c0_i32_0 : i32, i32, i32
  }
}

</mosaic_0001>

<bundles_post_ra>
// kernel: multi_head_attention.1
= control target key start
LH: loop header
LB: loop body
LE: loop exit
PB: predicated region body
PF: predicated region fallthrough
CT: control target
= control target key end

     0   :  { %9 = vsyncpa [#allocation3], 0  ;;  %s4950_s0 = inlined_call_operand.vmem [shape: f32[2,64,128], index: 0, kind: input, shape index: {}]   ;;  %s4951_s1 = inlined_call_operand.vmem [shape: f32[128,384], index: 1, kind: input, shape index: {}]   ;;  %s4952_s2 = inlined_call_operand.vmem [shape: f32[128,128], index: 2, kind: input, shape index: {}]   ;;  %s4953_s3 = inlined_call_operand.vmem [shape: f32[1,128], index: 3, kind: input, shape index: {}]   ;;  %s4954_s4 = inlined_call_operand.hbm [shape: f32[2,64,128], index: 4, kind: output, shape index: {}]  }
   0x1   :  { %11 = vsyncpa [#allocation3 + $0x1], 0  ;;  %s3800_s15 = smov 0   ;;  %s3802_s16 = smov 0  }
   0x2   :  { %s3804_s17 = smov 0   ;;  %s3806_s18 = smov 0  }
   0x3 LB: > { %s3821_s19 = sadd.s32 4294967295, %s3766_s18   ;;  %s2496_s20 = sadd.s32 4294967294, %s3766_s18   ;;  %s3766_s18 = sphi %s3806_s18, %s4970_s18   ;;  %s3762_s17 = sphi %s3804_s17, %s4969_s17   ;;  %s3758_s16 = sphi %s3802_s16, %s4968_s16   ;;  %s3754_s15 = sphi %s3800_s15, %s4967_s15  }
   0x4   : > { %s3825_s21 = sadd.s32 1, %s3766_s18   ;;  %s113_s22 = sadd.s32 1, %s3762_s17 }
   0x5   : > { %s110_s23 = ssub.s32 %s3766_s18, %s3825_s21  ;;  %p123_p0 = scmp.ne.s32.totalorder %s3762_s17, %s3758_s16 }
   0x6   : > { %p111_p1 = scmp.eq.s32.totalorder %s110_s23, 0  ;;  %p124_p2 = scmp.eq.s32.totalorder %s3821_s19, 1 }
   0x7   : > { %p129_p3 = scmp.ne.s32.totalorder %s3758_s16, %s3754_s15  ;;  %p130_p4 = scmp.eq.s32.totalorder %s2496_s20, 1 }
   0x8   : > { %s3836_s24 = scalar_select %p111_p1, %s3762_s17, %s113_s22  }
   0x9   : > { %p3838_p5 = por %p124_p2, %p123_p0  ;;  %p3842_p6 = por %p130_p4, %p129_p3 }
   0xa   : > { %p2499_p7 = scmp.ge.s32.totalorder %s3766_s18, 1  ;;  %p165_p8 = scmp.lt.s32.totalorder %s3766_s18, 3 }
   0xc   : > { %p166_p9 = pnand %p2499_p7, %p165_p8 }
   0xe   : > { %169 = sbr.rel (%p166_p9) target bundleno = 2775 (0xad7), region = 36 }
  0x15   : > { %v205_v0 = vld [vmem:[%s4951_s1 + $0x8] sm:$0xff]  ;;  %v208_v1 = vld [vmem:[%s4951_s1 + $0x20] sm:$0xff]  ;;  %p191_p10 = scmp.lt.s32.totalorder %s3821_s19, 1  ;;  %v207_v4 = vld [vmem:[%s4951_s1 + $0x18] sm:$0xff]  ;;  %v3768_v7 = vmov 0.0   ;;  %vm489_vm0 = vcmask 261120  }
  0x16   : > { %v204_v2 = vld [vmem:[%s4951_s1] sm:$0xff]  ;;  %v3095_v3 = vpack.c.bf16 %v208_v1, %v205_v0  ;;  %v211_v5 = vld [vmem:[%s4951_s1 + $0x38] sm:$0xff]  ;;  %v214_v6 = vld [vmem:[%s4951_s1 + $0x50] sm:$0xff]  ;;  %316 = vmatprep.mubr.f32.mxu0 %v3768_v7  ;;  %vm659_vm3 = vcmask 523264   ;;  %s3770_s29 = smov 64   ;;  %s3771_s30 = smov 32  }
  0x17   : > { %v3097_v8 = vpack.c.bf16 %v207_v4, %v204_v2  ;;  %v3099_v9 = vpack.c.bf16 %v214_v6, %v211_v5  ;;  %v210_v10 = vld [vmem:[%s4951_s1 + $0x30] sm:$0xff]  ;;  %v213_v11 = vld [vmem:[%s4951_s1 + $0x48] sm:$0xff]  ;;  %s192_s28 = scalar_select %p191_p10, %s3821_s19, 1  ;;  %v220_v13 = vld [vmem:[%s4951_s1 + $0x80] sm:$0xff]  ;;  %vm2275_vm11 = vcmask 785408  }
  0x18   : > { %v217_v12 = vld [vmem:[%s4951_s1 + $0x68] sm:$0xff]  ;;  %3096 = vmatprep.subr.bf16.mxu0 %v3095_v3  ;;  %v3101_v14 = vpack.c.bf16 %v213_v11, %v210_v10  ;;  %v216_v16 = vld [vmem:[%s4951_s1 + $0x60] sm:$0xff]  ;;  %v219_v17 = vld [vmem:[%s4951_s1 + $0x78] sm:$0xff]  ;;  %s2606_s11 = sshll.u32 %s3821_s19, 10  ;;  %s3772_s23 = smov [#allocation2]  }
  0x19   : > { %3098 = vmatpush1.bf16.msra.mxu0 %v3097_v8  ;;  %s2605_s5 = sshll.u32 %s192_s28, 6  ;;  %v3103_v15 = vpack.c.bf16 %v220_v13, %v217_v12  ;;  %v223_v18 = vld [vmem:[%s4951_s1 + $0x98] sm:$0xff]  ;;  %v226_v19 = vld [vmem:[%s4951_s1 + $0xb0] sm:$0xff]  ;;  %v3105_v20 = vpack.c.bf16 %v219_v17, %v216_v16  ;;  %v225_v23 = vld [vmem:[%s4951_s1 + $0xa8] sm:$0xff]  ;;  %s3769_s28 = smov 96  }
  0x1a   : > { %3100 = vmatprep.subr.bf16.mxu0 %v3099_v9  ;;  %s3896_s22 = scalar_lea.vmem %s4950_s0, %s2605_s5  ;;  %v3107_v21 = vpack.c.bf16 %v226_v19, %v223_v18  ;;  %v222_v22 = vld [vmem:[%s4951_s1 + $0x90] sm:$0xff]  ;;  %v229_v24 = vld [vmem:[%s4951_s1 + $0xc8] sm:$0xff]  ;;  %v232_v25 = vld [vmem:[%s4951_s1 + $0xe0] sm:$0xff]  ;;  %s4903_s14 = scalar_lea.hbm %s4954_s4, %s2606_s11 }
  0x1b   : > { %v196_v26 = vld [vmem:[%s3896_s22] sm:$0xff]  ;;  %v3109_v27 = vpack.c.bf16 %v225_v23, %v222_v22  ;;  %v3111_v28 = vpack.c.bf16 %v232_v25, %v229_v24  ;;  %v231_v30 = vld [vmem:[%s4951_s1 + $0xd8] sm:$0xff]  ;;  %v238_v32 = vld [vmem:[%s4951_s1 + $0x110] sm:$0xff]  ;;  %s3708_s27 = sshll.u32 %s3772_s23, 4  ;;  %s3709_s27 = int_to_ptr.vmem [resolvable:$false] %s3708_s27 }
  0x1c   : > { %2815 = vmatprep.mubr.f32.mxu1 %v196_v26  ;;  %v228_v29 = vld [vmem:[%s4951_s1 + $0xc0] sm:$0xff]  ;;  %v235_v31 = vld [vmem:[%s4951_s1 + $0xf8] sm:$0xff]  ;;  %v234_v35 = vld [vmem:[%s4951_s1 + $0xf0] sm:$0xff]  ;;  %s3710_s6 = scalar_lea.vmem %s3709_s27, 2048 }
  0x1d   : > { %3102 = vmatpush1.bf16.msra.mxu0 %v3101_v14  ;;  %v3113_v33 = vpack.c.bf16 %v231_v30, %v228_v29  ;;  %v3115_v34 = vpack.c.bf16 %v238_v32, %v235_v31  ;;  %v237_v36 = vld [vmem:[%s4951_s1 + $0x108] sm:$0xff]  ;;  %v244_v38 = vld [vmem:[%s4951_s1 + $0x140] sm:$0xff]  ;;  %v243_v42 = vld [vmem:[%s4951_s1 + $0x138] sm:$0xff] }
  0x1e   : > { %3104 = vmatprep.subr.bf16.mxu0 %v3103_v15  ;;  %v241_v37 = vld [vmem:[%s4951_s1 + $0x128] sm:$0xff]  ;;  %v3117_v39 = vpack.c.bf16 %v237_v36, %v234_v35  ;;  %v240_v41 = vld [vmem:[%s4951_s1 + $0x120] sm:$0xff]  ;;  %v247_v43 = vld [vmem:[%s4951_s1 + $0x158] sm:$0xff] }
  0x1f   : > { %v3119_v40 = vpack.c.bf16 %v244_v38, %v241_v37  ;;  %v250_v44 = vld [vmem:[%s4951_s1 + $0x170] sm:$0xff]  ;;  %v3121_v45 = vpack.c.bf16 %v243_v42, %v240_v41  ;;  %v249_v48 = vld [vmem:[%s4951_s1 + $0x168] sm:$0xff]  ;;  %v199_v52 = vld [vmem:[%s3896_s22 + $0x18] sm:$0xff]  ;;  %v470_v42 = vlaneseq }
  0x20   : > { %v3123_v46 = vpack.c.bf16 %v250_v44, %v247_v43  ;;  %v246_v47 = vld [vmem:[%s4951_s1 + $0x150] sm:$0xff]  ;;  %v197_v50 = vld [vmem:[%s3896_s22 + $0x8] sm:$0xff]  ;;  %v200_v53 = vld [vmem:[%s3896_s22 + $0x20] sm:$0xff] }
  0x21   : > { %3106 = vmatpush1.bf16.msra.mxu0 %v3105_v20  ;;  %v3125_v49 = vpack.c.bf16 %v249_v48, %v246_v47  ;;  %v198_v51 = vld [vmem:[%s3896_s22 + $0x10] sm:$0xff]  ;;  %v201_v54 = vld [vmem:[%s3896_s22 + $0x28] sm:$0xff]  ;;  %v203_v56 = vld [vmem:[%s3896_s22 + $0x38] sm:$0xff]  ;;  %v4077_v43 = vshrl.u32 %v470_v42, 7 }
  0x22   : > { %3108 = vmatprep.subr.bf16.mxu0 %v3107_v21  ;;  %v202_v55 = vld [vmem:[%s3896_s22 + $0x30] sm:$0xff]  ;;  %v209_v58 = vld [vmem:[%s4951_s1 + $0x28] sm:$0xff]  ;;  %v212_v59 = vld [vmem:[%s4951_s1 + $0x40] sm:$0xff] }
  0x23   : > { %v206_v57 = vld [vmem:[%s4951_s1 + $0x10] sm:$0xff]  ;;  %v215_v61 = vld [vmem:[%s4951_s1 + $0x58] sm:$0xff]  ;;  %v221_v0 = vld [vmem:[%s4951_s1 + $0x88] sm:$0xff]  ;;  %v4080_v44 = vadd.s32 8, %v4077_v43  ;;  %v4087_v47 = vadd.s32 24, %v4077_v43 }
  0x24   : > { %v3127_v60 = vpack.c.bf16 %v209_v58, %v206_v57  ;;  %v3131_v62 = vpack.c.bf16 %v215_v61, %v212_v59  ;;  %v218_v63 = vld [vmem:[%s4951_s1 + $0x70] sm:$0xff]  ;;  %v224_v2 = vld [vmem:[%s4951_s1 + $0xa0] sm:$0xff]  ;;  %v227_v3 = vld [vmem:[%s4951_s1 + $0xb8] sm:$0xff]  ;;  %v4109_v58 = vadd.s32 32, %v4077_v43 }
  0x25   : > { %3110 = vmatpush1.bf16.msra.mxu0 %v3109_v27  ;;  %v3135_v1 = vpack.c.bf16 %v221_v0, %v218_v63  ;;  %v3139_v4 = vpack.c.bf16 %v227_v3, %v224_v2  ;;  %v230_v5 = vld [vmem:[%s4951_s1 + $0xd0] sm:$0xff]  ;;  %v233_v6 = vld [vmem:[%s4951_s1 + $0xe8] sm:$0xff]  ;;  %v236_v8 = vld [vmem:[%s4951_s1 + $0x100] sm:$0xff] }
  0x26   : > { %3112 = vmatprep.subr.bf16.mxu0 %v3111_v28  ;;  %3128 = vmatprep.subr.bf16.mxu1 %v3127_v60  ;;  %v239_v9 = vld [vmem:[%s4951_s1 + $0x118] sm:$0xff]  ;;  %v242_v11 = vld [vmem:[%s4951_s1 + $0x130] sm:$0xff]  ;;  %v245_v12 = vld [vmem:[%s4951_s1 + $0x148] sm:$0xff] }
  0x27   : > { %3130 = vmatpush3.bf16.msra.mxu1 %v3127_v60  ;;  %v3147_v10 = vpack.c.bf16 %v239_v9, %v236_v8  ;;  %v3151_v13 = vpack.c.bf16 %v245_v12, %v242_v11  ;;  %v248_v14 = vld [vmem:[%s4951_s1 + $0x160] sm:$0xff]  ;;  %v251_v15 = vld [vmem:[%s4951_s1 + $0x178] sm:$0xff]  ;;  %vm4023_vm1 = vmpackc.low %vm489_vm0, %vm489_vm0  ;;  %v4114_v60 = vadd.s32 40, %v4077_v43 }
  0x28   : > { %3132 = vmatprep.subr.bf16.mxu1 %v3131_v62  ;;  %v3155_v16 = vpack.c.bf16 %v251_v15, %v248_v14 }
  0x29   : > { %3114 = vmatpush1.bf16.msra.mxu0 %v3113_v33 }
  0x2a   : > { %3116 = vmatprep.subr.bf16.mxu0 %v3115_v34 }
  0x2b   : > { %3134 = vmatpush3.bf16.msra.mxu1 %v3131_v62 }
  0x2c   : > { %3136 = vmatprep.subr.bf16.mxu1 %v3135_v1 }
  0x2d   : > { %3118 = vmatpush1.bf16.msra.mxu0 %v3117_v39 }
  0x2e   : > { %3120 = vmatprep.subr.bf16.mxu0 %v3119_v40 }
  0x2f   : > { %3138 = vmatpush3.bf16.msra.mxu1 %v3135_v1 }
  0x30   : > { %3140 = vmatprep.subr.bf16.mxu1 %v3139_v4 }
  0x31   : > { %3122 = vmatpush1.bf16.msra.mxu0 %v3121_v45  ;;  %v4082_v45 = vand.u32 127, %v470_v42 }
  0x32   : > { %3124 = vmatprep.subr.bf16.mxu0 %v3123_v46 }
  0x33   : > { %3142 = vmatpush3.bf16.msra.mxu1 %v3139_v4  ;;  %vm482_vm2 = vcmp.le.s32.totalorder %v4082_v45, %v4080_v44  ;;  %vm481_vm4 = vcmp.le.s32.totalorder %v4082_v45, %v4077_v43  ;;  %vm484_vm5 = vcmp.le.s32.totalorder %v4082_v45, %v4087_v47  ;;  %vm485_vm7 = vcmp.le.s32.totalorder %v4082_v45, %v4109_v58 }
  0x34   : > { %v4133_v4 = vadd.s32 48, %v4077_v43  ;;  %vm486_vm8 = vcmp.le.s32.totalorder %v4082_v45, %v4114_v60 }
  0x35   : > { %3126 = vmatpush1.bf16.msra.mxu0 %v3125_v49 }
  0x36   : > { %vm487_vm9 = vcmp.le.s32.totalorder %v4082_v45, %v4133_v4 }
  0x38   : > { %317 = vmatmul.mubr.f32.vlgmr.msra.gmra.mrb[0].mxu0 %v196_v26 }
  0x39   : > { %322 = vmatprep.mubr.f32.mxu0 %v3768_v7 }
  0x3c   : > { %323 = vmatmul.mubr.f32.gmra.mrb[2].mxu0 %v197_v50 }
  0x3d   : > { %328 = vmatprep.mubr.f32.mxu0 %v3768_v7 }
  0x40   : > { %329 = vmatmul.mubr.f32.gmra.mrb[4].mxu0 %v198_v51 }
  0x41   : > { %334 = vmatprep.mubr.f32.mxu0 %v3768_v7 }
  0x44   : > { %335 = vmatmul.mubr.f32.gmra.mrb[6].mxu0 %v199_v52 }
  0x45   : > { %340 = vmatprep.mubr.f32.mxu0 %v3768_v7 }
  0x48   : > { %341 = vmatmul.mubr.f32.gmra.mrb[8].mxu0 %v200_v53 }
  0x49   : > { %346 = vmatprep.mubr.f32.mxu0 %v3768_v7 }
  0x4c   : > { %347 = vmatmul.mubr.f32.gmra.mrb[10].mxu0 %v201_v54 }
  0x4d   : > { %352 = vmatprep.mubr.f32.mxu0 %v3768_v7 }
  0x50   : > { %353 = vmatmul.mubr.f32.gmra.mrb[12].mxu0 %v202_v55 }
  0x51   : > { %358 = vmatprep.mubr.f32.mxu0 %v3768_v7  ;;  %v3143_v7 = vpack.c.bf16 %v233_v6, %v230_v5  ;;  %v4138_v6 = vadd.s32 56, %v4077_v43 }
  0x53   : > { %3144 = vmatprep.subr.bf16.mxu1 %v3143_v7  ;;  %vm488_vm10 = vcmp.le.s32.totalorder %v4082_v45, %v4138_v6 }
  0x54   : > { %359 = vmatmul.mubr.f32.gmra.mrb[14].mxu0 %v203_v56  ;;  %3146 = vmatpush3.bf16.msra.mxu1 %v3143_v7 }
  0x55   : > { %3148 = vmatprep.subr.bf16.mxu1 %v3147_v10 }
  0x58   : > { %3150 = vmatpush3.bf16.msra.mxu1 %v3147_v10 }
  0x59   : > { %3152 = vmatprep.subr.bf16.mxu1 %v3151_v13 }
  0x5c   : > { %3154 = vmatpush3.bf16.msra.mxu1 %v3151_v13 }
  0x5d   : > { %3156 = vmatprep.subr.bf16.mxu1 %v3155_v16 }
  0x60   : > { %3158 = vmatpush3.bf16.msra.mxu1 %v3155_v16 }
  0x63   : > { %2816 = vmatmul.mubr.f32.vlgmr.msra.gmra.mrb[0].mxu1 %v197_v50 }
  0x64   : > { %2818 = vmatprep.mubr.f32.mxu1 %v198_v51  ;;  %v4092_v51 = vadd.s32 16, %v4077_v43 }
  0x66   : > { %vm483_vm6 = vcmp.le.s32.totalorder %v4082_v45, %v4092_v51 }
  0x67   : > { %2819 = vmatmul.mubr.f32.gmra.mrb[2].mxu1 %v199_v52 }
  0x68   : > { %2821 = vmatprep.mubr.f32.mxu1 %v200_v53 }
  0x6b   : > { %2822 = vmatmul.mubr.f32.gmra.mrb[4].mxu1 %v201_v54 }
  0x6c   : > { %2824 = vmatprep.mubr.f32.mxu1 %v202_v55 }
  0x6f   : > { %2825 = vmatmul.mubr.f32.gmra.mrb[6].mxu1 %v203_v56 }
 0x10b   : > { %v4015_v17 = vpop.f32.mrb[0].mxu0 }
 0x10c   : > { %v320_v18 = vpop.f32.mrb[1].mxu0  ;;  %2843 = vmatprep.mubr.msk.f32.mxu0 %vm489_vm0, %v4015_v17 }
 0x10f   : > { %v4019_v19 = vpop.f32.mrb[2].mxu0 }
 0x110   : > { %v326_v20 = vpop.f32.mrb[3].mxu0 }
 0x111   : > { %v3159_v22 = vpack.c.bf16 %v326_v20, %v320_v18  ;;  %v4027_v23 = vpack.i.bf16 %v326_v20, %v320_v18 }
 0x113   : > { %v4029_v24 = vpop.f32.mrb[4].mxu0  ;;  %3161 = vmatprep.subr.msk.bf16.mxu0 %vm4023_vm1, %v3159_v22 }
 0x114   : > { %v332_v25 = vpop.f32.mrb[5].mxu0  ;;  %3164 = vmatpush3.bf16.xpose.msk.msra.mxu0 %vm4023_vm1, %v3159_v22 }
 0x117   : > { %v4035_v26 = vpop.f32.mrb[6].mxu0 }
 0x118   : > { %v338_v27 = vpop.f32.mrb[7].mxu0 }
 0x119   : > { %v3165_v28 = vpack.c.bf16 %v338_v27, %v332_v25  ;;  %v4037_v29 = vpack.i.bf16 %v338_v27, %v332_v25 }
 0x11b   : > { %v4039_v30 = vpop.f32.mrb[8].mxu0  ;;  %3167 = vmatprep.subr.msk.bf16.mxu0 %vm4023_vm1, %v3165_v28 }
 0x11c   : > { %v344_v31 = vpop.f32.mrb[9].mxu0  ;;  %3170 = vmatpush3.bf16.xpose.msk.msra.mxu0 %vm4023_vm1, %v3165_v28 }
 0x11f   : > { %v4045_v32 = vpop.f32.mrb[10].mxu0 }
 0x120   : > { %v350_v33 = vpop.f32.mrb[11].mxu0 }
 0x121   : > { %v3171_v34 = vpack.c.bf16 %v350_v33, %v344_v31  ;;  %v4047_v35 = vpack.i.bf16 %v350_v33, %v344_v31 }
 0x123   : > { %v4049_v36 = vpop.f32.mrb[12].mxu0  ;;  %3173 = vmatprep.subr.msk.bf16.mxu0 %vm4023_vm1, %v3171_v34 }
 0x124   : > { %v356_v37 = vpop.f32.mrb[13].mxu0  ;;  %3176 = vmatpush3.bf16.xpose.msk.msra.mxu0 %vm4023_vm1, %v3171_v34 }
 0x127   : > { %v4055_v38 = vpop.f32.mrb[14].mxu0 }
 0x128   : > { %v362_v39 = vpop.f32.mrb[15].mxu0 }
 0x129   : > { %v3177_v40 = vpack.c.bf16 %v362_v39, %v356_v37  ;;  %v4057_v41 = vpack.i.bf16 %v362_v39, %v356_v37 }
 0x12b   : > { %3179 = vmatprep.subr.msk.bf16.mxu0 %vm4023_vm1, %v3177_v40 }
 0x12c   : > { %3182 = vmatpush3.bf16.xpose.msk.msra.mxu0 %vm4023_vm1, %v3177_v40 }
 0x133   : > { %2844 = vmatmul.mubr.msk.f32.vlgmr.msra.gmra.mrb[16].mxu0 %vm489_vm0, %v4019_v19 }
 0x134   : > { %2846 = vmatprep.mubr.msk.f32.mxu0 %vm489_vm0, %v4029_v24 }
 0x136   : > { %v2817_v25 = vpop.f32.mrb[0].mxu1 }
 0x137   : > { %2847 = vmatmul.mubr.msk.f32.gmra.mrb[18].mxu0 %vm489_vm0, %v4035_v26  ;;  %v431_v27 = vpop.f32.mrb[1].mxu1 }
 0x138   : > { %2849 = vmatprep.mubr.msk.f32.mxu0 %vm489_vm0, %v4039_v30  ;;  %v3183_v28 = vpack.c.bf16 %v2817_v25, %v431_v27  ;;  %v4174_v33 = vpack.i.bf16 %v2817_v25, %v431_v27 }
 0x13a   : > { %v2820_v31 = vpop.f32.mrb[2].mxu1  ;;  %3184 = vmatprep.subr.bf16.mxu1 %v3183_v28 }
 0x13b   : > { %2850 = vmatmul.mubr.msk.f32.gmra.mrb[20].mxu0 %vm489_vm0, %v4045_v32  ;;  %v441_v34 = vpop.f32.mrb[3].mxu1  ;;  %3186 = vmatpush3.bf16.msra.mxu1 %v3183_v28 }
 0x13c   : > { %2852 = vmatprep.mubr.msk.f32.mxu0 %vm489_vm0, %v4049_v36  ;;  %v3187_v37 = vpack.c.bf16 %v2820_v31, %v441_v34  ;;  %v4176_v39 = vpack.i.bf16 %v2820_v31, %v441_v34 }
 0x13e   : > { %v2823_v40 = vpop.f32.mrb[4].mxu1  ;;  %3188 = vmatprep.subr.bf16.mxu1 %v3187_v37 }
 0x13f   : > { %2853 = vmatmul.mubr.msk.f32.gmra.mrb[22].mxu0 %vm489_vm0, %v4055_v38  ;;  %v451_v42 = vpop.f32.mrb[5].mxu1  ;;  %3190 = vmatpush3.bf16.msra.mxu1 %v3187_v37 }
 0x206   : > { %v2845_v46 = vpop.f32.mrb[16].mxu0 }
 0x207   : > { %v644_v48 = vmul.f32 0.17677669, %v2845_v46  ;;  %v604_v49 = vpop.f32.mrb[17].mxu0  ;;  %v3191_v46 = vpack.c.bf16 %v2823_v40, %v451_v42 }
 0x208   : > { %v643_v50 = vmul.f32 0.17677669, %v604_v49  ;;  %v2826_v49 = vpop.f32.mrb[6].mxu1 }
 0x209   : > { %v4097_v52 = vsel %vm482_vm2, %v644_v48, -inf  ;;  %v4178_v48 = vpack.i.bf16 %v2823_v40, %v451_v42  ;;  %3192 = vmatprep.subr.bf16.mxu1 %v3191_v46 }
 0x20a   : > { %v2848_v53 = vpop.f32.mrb[18].mxu0  ;;  %v663_v54 = vsel %vm659_vm3, %v4097_v52, -inf  ;;  %v4106_v57 = vsel %vm481_vm4, %v643_v50, -inf  ;;  %v461_v50 = vpop.f32.mrb[7].mxu1  ;;  %3194 = vmatpush3.bf16.msra.mxu1 %v3191_v46 }
 0x20b   : > { %v646_v55 = vmul.f32 0.17677669, %v2848_v53  ;;  %664 = vmax.xlane.f32.xlu0 %v663_v54  ;;  %v614_v56 = vpop.f32.mrb[19].mxu0  ;;  %v660_v63 = vsel %vm659_vm3, %v4106_v57, -inf  ;;  %v3195_v53 = vpack.c.bf16 %v2826_v49, %v461_v50  ;;  %v4182_v54 = vpack.i.bf16 %v2826_v49, %v461_v50 }
 0x20c   : > { %v645_v59 = vmul.f32 0.17677669, %v614_v56 }
 0x20d   : > { %v4119_v61 = vsel %vm484_vm5, %v646_v55, -inf  ;;  %3196 = vmatprep.subr.bf16.mxu1 %v3195_v53 }
 0x20e   : > { %v2851_v62 = vpop.f32.mrb[20].mxu0  ;;  %v669_v0 = vsel %vm659_vm3, %v4119_v61, -inf  ;;  %v4128_v3 = vsel %vm483_vm6, %v645_v59, -inf  ;;  %3198 = vmatpush3.bf16.msra.mxu1 %v3195_v53 }
 0x20f   : > { %v648_v1 = vmul.f32 0.17677669, %v2851_v62  ;;  %661 = vmax.xlane.f32.xlu0 %v660_v63  ;;  %670 = vmax.xlane.f32.xlu1 %v669_v0  ;;  %v624_v2 = vpop.f32.mrb[21].mxu0  ;;  %v666_v8 = vsel %vm659_vm3, %v4128_v3, -inf }
 0x210   : > { %v647_v5 = vmul.f32 0.17677669, %v624_v2 }
 0x211   : > { %v4152_v13 = vsel %vm486_vm8, %v648_v1, -inf }
 0x212   : > { %v2854_v7 = vpop.f32.mrb[22].mxu0  ;;  %v4145_v9 = vsel %vm485_vm7, %v647_v5, -inf  ;;  %v675_v15 = vsel %vm659_vm3, %v4152_v13, -inf }
 0x213   : > { %v650_v10 = vmul.f32 0.17677669, %v2854_v7  ;;  %667 = vmax.xlane.f32.xlu1 %v666_v8  ;;  %v634_v11 = vpop.f32.mrb[23].mxu0  ;;  %v672_v12 = vsel %vm659_vm3, %v4145_v9, -inf }
 0x214   : > { %v649_v14 = vmul.f32 0.17677669, %v634_v11  ;;  %673 = vmax.xlane.f32.xlu0 %v672_v12 }
 0x215   : > { %v4170_v20 = vsel %vm488_vm10, %v650_v10, -inf }
 0x216   : > { %v4163_v16 = vsel %vm487_vm9, %v649_v14, -inf  ;;  %v681_v22 = vsel %vm659_vm3, %v4170_v20, -inf }
 0x217   : > { %676 = vmax.xlane.f32.xlu1 %v675_v15  ;;  %v678_v18 = vsel %vm659_vm3, %v4163_v16, -inf }
 0x218   : > { %679 = vmax.xlane.f32.xlu0 %v678_v18 }
 0x21b   : > { %682 = vmax.xlane.f32.xlu1 %v681_v22 }
 0x22c   : > { %3402 = vrot.lane.b32.xlu1 %v4037_v29, %s3769_s28 }
 0x22e   : > { %3397 = vrot.lane.b32.xlu0 %v4027_v23, %s3769_s28 }
 0x298   : > { %v665_v55 = vpop.xlane.xlu0 %664 }
 0x299   : > { %v685_v56 = vsub.f32 %v4097_v52, %v665_v55 }
 0x29b   : > { %v694_v59 = vmul.f32 1.442695, %v685_v56 }
 0x29c   : > { %v662_v62 = vpop.xlane.xlu0 %661  ;;  %v671_v14 = vpop.xlane.xlu1 %670 }
 0x29d   : > { %3576 = vpow2.f32 %v694_v59  ;;  %v684_v63 = vsub.f32 %v4106_v57, %v662_v62  ;;  %v687_v18 = vsub.f32 %v4119_v61, %v671_v14 }
 0x29f   : > { %v692_v0 = vmul.f32 1.442695, %v684_v63  ;;  %v698_v27 = vmul.f32 1.442695, %v687_v18 }
 0x2a0   : > { %v668_v15 = vpop.xlane.xlu1 %667 }
 0x2a1   : > { %3578 = vpow2.f32 %v692_v0  ;;  %v674_v1 = vpop.xlane.xlu0 %673  ;;  %v686_v25 = vsub.f32 %v4128_v3, %v668_v15 }
 0x2a2   : > { %3580 = vpow2.f32 %v698_v27  ;;  %v688_v34 = vsub.f32 %v4145_v9, %v674_v1 }
 0x2a3   : > { %v696_v31 = vmul.f32 1.442695, %v686_v25 }
 0x2a4   : > { %v677_v22 = vpop.xlane.xlu1 %676  ;;  %v700_v40 = vmul.f32 1.442695, %v688_v34 }
 0x2a5   : > { %v680_v2 = vpop.xlane.xlu0 %679  ;;  %v689_v28 = vsub.f32 %v4152_v13, %v677_v22  ;;  %3582 = vpow2.f32 %v696_v31 }
 0x2a6   : > { %v690_v56 = vsub.f32 %v4163_v16, %v680_v2 }
 0x2a7   : > { %v4188_v5 = vpop.eup %3576  ;;  %v702_v37 = vmul.f32 1.442695, %v689_v28 }
 0x2a8   : > { %v711_v7 = vsel %vm659_vm3, %v4188_v5, 0.0  ;;  %v683_v53 = vpop.xlane.xlu1 %682  ;;  %v704_v62 = vmul.f32 1.442695, %v690_v56 }
 0x2a9   : > { %712 = vadd.xlane.f32.xlu1 %v711_v7  ;;  %v3398_v8 = vpop.permute.xlu0 %3397  ;;  %3584 = vpow2.f32 %v702_v37  ;;  %v691_v55 = vsub.f32 %v4170_v20, %v683_v53 }
 0x2aa   : > { %v3400_v10 = vunpack.i.h.bf16 %v3398_v8  ;;  %v3399_v11 = vunpack.i.l.bf16 %v3398_v8  ;;  %3586 = vpow2.f32 %v700_v40 }
 0x2ab   : > { %v4192_v12 = vpop.eup %3578  ;;  %v706_v59 = vmul.f32 1.442695, %v691_v55 }
 0x2ac   : > { %v4194_v52 = vpack.c.bf16 %v3400_v10, %v3399_v11  ;;  %v708_v57 = vsel %vm659_vm3, %v4192_v12, 0.0  ;;  %v4209_v42 = vpop.eup %3580  ;;  %v3403_v1 = vpop.permute.xlu1 %3402 }
 0x2ad   : > { %709 = vadd.xlane.f32.xlu0 %v708_v57  ;;  %v717_v61 = vsel %vm659_vm3, %v4209_v42, 0.0  ;;  %3588 = vpow2.f32 %v706_v59  ;;  %v3405_v18 = vunpack.i.h.bf16 %v3403_v1  ;;  %v3404_v22 = vunpack.i.l.bf16 %v3403_v1 }
 0x2ae   : > { %3201 = vmatprep.subr.msk.bf16.mxu1 %vm4023_vm1, %v4194_v52  ;;  %3590 = vpow2.f32 %v704_v62 }
 0x2af   : > { %v4211_v46 = vpop.eup %3582  ;;  %v3205_v28 = vpack.c.bf16 %v3405_v18, %v3404_v22 }
 0x2b0   : > { %v714_v9 = vsel %vm659_vm3, %v4211_v46, 0.0 }
 0x2b3   : > { %v4215_v3 = vpop.eup %3584 }
 0x2b4   : > { %v723_v13 = vsel %vm659_vm3, %v4215_v3, 0.0  ;;  %v4221_v49 = vpop.eup %3586 }
 0x2b5   : > { %v720_v50 = vsel %vm659_vm3, %v4221_v49, 0.0 }
 0x2b7   : > { %v4241_v63 = vpop.eup %3588 }
 0x2b8   : > { %v729_v16 = vsel %vm659_vm3, %v4241_v63, 0.0  ;;  %v4247_v20 = vpop.eup %3590 }
 0x2b9   : > { %v726_v0 = vsel %vm659_vm3, %v4247_v20, 0.0 }
 0x2ba   : > { %3412 = vrot.lane.b32.xlu1 %v4027_v23, %s3770_s29 }
 0x2c3   : > { %3407 = vrot.lane.b32.xlu0 %v4047_v35, %s3769_s28 }
 0x2de   : > { %718 = vadd.xlane.f32.xlu1 %v717_v61 }
 0x2e2   : > { %724 = vadd.xlane.f32.xlu1 %v723_v13  ;;  %715 = vadd.xlane.f32.xlu0 %v714_v9 }
 0x2e6   : > { %721 = vadd.xlane.f32.xlu0 %v720_v50 }
 0x2f3   : > { %3422 = vrot.lane.b32.xlu1 %v4037_v29, %s3770_s29 }
 0x2fc   : > { %3417 = vrot.lane.b32.xlu0 %v4057_v41, %s3769_s28 }
 0x300   : > { %877 = vrot.lane.b32.xlu0 %v4015_v17, %s3769_s28 }
 0x304   : > { %3427 = vrot.lane.b32.xlu0 %v4047_v35, %s3770_s29 }
 0x308   : > { %883 = vrot.lane.b32.xlu0 %v4035_v26, %s3769_s28 }
 0x30c   : > { %885 = vrot.lane.b32.xlu0 %v4039_v30, %s3769_s28 }
 0x310   : > { %889 = vrot.lane.b32.xlu0 %v4049_v36, %s3769_s28 }
 0x314   : > { %1311 = vrot.lane.b32.xlu0 %v4015_v17, %s3770_s29 }
 0x317   : > { %730 = vadd.xlane.f32.xlu1 %v729_v16 }
 0x318   : > { %1315 = vrot.lane.b32.xlu0 %v4029_v24, %s3770_s29 }
 0x31b   : > { %727 = vadd.xlane.f32.xlu1 %v726_v0 }
 0x31c   : > { %1319 = vrot.lane.b32.xlu0 %v4039_v30, %s3770_s29 }
 0x320   : > { %1323 = vrot.lane.b32.xlu0 %v4049_v36, %s3770_s29 }
 0x32c   : > { %879 = vrot.lane.b32.xlu1 %v4019_v19, %s3769_s28 }
 0x330   : > { %881 = vrot.lane.b32.xlu1 %v4029_v24, %s3769_s28 }
 0x334   : > { %3432 = vrot.lane.b32.xlu1 %v4057_v41, %s3770_s29 }
 0x336   : > { %v713_v2 = vpop.xlane.xlu1 %712 }
 0x337   : > { %3592 = vrcp.f32 %v713_v2 }
 0x338   : > { %887 = vrot.lane.b32.xlu1 %v4045_v32, %s3769_s28 }
 0x33a   : > { %v3413_v7 = vpop.permute.xlu1 %3412  ;;  %v710_v8 = vpop.xlane.xlu0 %709 }
 0x33b   : > { %v3415_v10 = vunpack.i.h.bf16 %v3413_v7  ;;  %v3414_v11 = vunpack.i.l.bf16 %v3413_v7  ;;  %3594 = vrcp.f32 %v710_v8 }
 0x33c   : > { %891 = vrot.lane.b32.xlu1 %v4055_v38, %s3769_s28 }
 0x33d   : > { %v3239_v57 = vpack.c.bf16 %v3415_v10, %v3414_v11 }
 0x33e   : > { %v3408_v31 = vpop.permute.xlu0 %3407 }
 0x33f   : > { %3241 = vmatprep.subr.msk.bf16.mxu0 %vm4023_vm1, %v3239_v57 }
 0x340   : > { %3244 = vmatpush3.bf16.xpose.msk.msra.mxu0 %vm4023_vm1, %v3239_v57  ;;  %1313 = vrot.lane.b32.xlu1 %v4019_v19, %s3770_s29 }
 0x341   : > { %v3593_v14 = vpop.eup %3592 }
 0x342   : > { %v741_v27 = vmul.f32 %v3593_v14, %v4188_v5  ;;  %v3410_v5 = vunpack.i.h.bf16 %v3408_v31 }
 0x344   : > { %1317 = vrot.lane.b32.xlu1 %v4035_v26, %s3770_s29 }
 0x345   : > { %v3595_v15 = vpop.eup %3594 }
 0x346   : > { %v740_v25 = vmul.f32 %v3595_v15, %v4192_v12  ;;  %v3409_v12 = vunpack.i.l.bf16 %v3408_v31 }
 0x348   : > { %1321 = vrot.lane.b32.xlu1 %v4045_v32, %s3770_s29  ;;  %2871 = vmatprep.mubr.msk.f32.mxu1 %vm659_vm3, %v740_v25  ;;  %v3211_v34 = vpack.c.bf16 %v3410_v5, %v3409_v12 }
 0x349   : > { %2872 = vmatmul.mubr.msk.f32.vlgmr.msra.gmra.mrb[8].mxu1 %vm659_vm3, %v741_v27 }
 0x34a   : > { %3204 = vmatpush3.bf16.xpose.msk.msra.mxu1 %vm4023_vm1, %v4194_v52 }
 0x34b   : > { %3207 = vmatprep.subr.msk.bf16.mxu1 %vm4023_vm1, %v3205_v28 }
 0x34c   : > { %1325 = vrot.lane.b32.xlu1 %v4055_v38, %s3770_s29 }
 0x352   : > { %3210 = vmatpush3.bf16.xpose.msk.msra.mxu1 %vm4023_vm1, %v3205_v28 }
 0x353   : > { %3213 = vmatprep.subr.msk.bf16.mxu1 %vm4023_vm1, %v3211_v34 }
 0x35a   : > { %3216 = vmatpush3.bf16.xpose.msk.msra.mxu1 %vm4023_vm1, %v3211_v34 }
 0x36b   : > { %v719_v37 = vpop.xlane.xlu1 %718 }
 0x36c   : > { %3596 = vrcp.f32 %v719_v37 }
 0x36f   : > { %v725_v52 = vpop.xlane.xlu1 %724  ;;  %v716_v40 = vpop.xlane.xlu0 %715 }
 0x370   : > { %3598 = vrcp.f32 %v716_v40 }
 0x371   : > { %3600 = vrcp.f32 %v725_v52 }
 0x373   : > { %v3423_v61 = vpop.permute.xlu1 %3422  ;;  %v722_v13 = vpop.xlane.xlu0 %721 }
 0x374   : > { %v3425_v9 = vunpack.i.h.bf16 %v3423_v61  ;;  %v3424_v50 = vunpack.i.l.bf16 %v3423_v61  ;;  %3602 = vrcp.f32 %v722_v13 }
 0x376   : > { %v3245_v53 = vpack.c.bf16 %v3425_v9, %v3424_v50  ;;  %v3597_v62 = vpop.eup %3596 }
 0x377   : > { %v3418_v55 = vpop.permute.xlu0 %3417  ;;  %v743_v8 = vmul.f32 %v3597_v62, %v4209_v42 }
 0x378   : > { %v3420_v56 = vunpack.i.h.bf16 %v3418_v55  ;;  %v3419_v59 = vunpack.i.l.bf16 %v3418_v55  ;;  %3247 = vmatprep.subr.msk.bf16.mxu0 %vm4023_vm1, %v3245_v53 }
 0x379   : > { %3250 = vmatpush3.bf16.xpose.msk.msra.mxu0 %vm4023_vm1, %v3245_v53 }
 0x37a   : > { %v3217_v16 = vpack.c.bf16 %v3420_v56, %v3419_v59  ;;  %v3599_v0 = vpop.eup %3598 }
 0x37b   : > { %v878_v1 = vpop.permute.xlu0 %877  ;;  %v742_v2 = vmul.f32 %v3599_v0, %v4211_v46  ;;  %v3601_v7 = vpop.eup %3600 }
 0x37c   : > { %3219 = vmatprep.subr.msk.bf16.mxu1 %vm4023_vm1, %v3217_v16  ;;  %v745_v46 = vmul.f32 %v3601_v7, %v4215_v3 }
 0x37d   : > { %3222 = vmatpush3.bf16.xpose.msk.msra.mxu1 %vm4023_vm1, %v3217_v16  ;;  %2874 = vmatprep.mubr.msk.f32.mxu1 %vm659_vm3, %v742_v2 }
 0x37e   : > { %v3603_v10 = vpop.eup %3602  ;;  %2875 = vmatmul.mubr.msk.f32.gmra.mrb[10].mxu1 %vm659_vm3, %v743_v8 }
 0x37f   : > { %v3428_v11 = vpop.permute.xlu0 %3427  ;;  %v744_v57 = vmul.f32 %v3603_v10, %v4221_v49 }
 0x380   : > { %v3430_v14 = vunpack.i.h.bf16 %v3428_v11  ;;  %v3429_v15 = vunpack.i.l.bf16 %v3428_v11 }
 0x381   : > { %2877 = vmatprep.mubr.msk.f32.mxu1 %vm659_vm3, %v744_v57 }
 0x382   : > { %v3251_v18 = vpack.c.bf16 %v3430_v14, %v3429_v15  ;;  %2878 = vmatmul.mubr.msk.f32.gmra.mrb[12].mxu1 %vm659_vm3, %v745_v46 }
 0x383   : > { %v884_v22 = vpop.permute.xlu0 %883 }
 0x384   : > { %3253 = vmatprep.subr.msk.bf16.mxu0 %vm4023_vm1, %v3251_v18 }
 0x385   : > { %3256 = vmatpush3.bf16.xpose.msk.msra.mxu0 %vm4023_vm1, %v3251_v18 }
 0x387   : > { %v886_v42 = vpop.permute.xlu0 %885 }
 0x38b   : > { %v890_v25 = vpop.permute.xlu0 %889 }
 0x38f   : > { %v1312_v27 = vpop.permute.xlu0 %1311 }
 0x390   : > { %2955 = vmatprep.mubr.msk.f32.mxu0 %vm489_vm0, %v1312_v27 }
 0x3a4   : > { %v731_v49 = vpop.xlane.xlu1 %730 }
 0x3a5   : > { %3604 = vrcp.f32 %v731_v49 }
 0x3a8   : > { %v728_v28 = vpop.xlane.xlu1 %727 }
 0x3a9   : > { %3606 = vrcp.f32 %v728_v28 }
 0x3ac   : > { %v880_v3 = vpop.permute.xlu1 %879 }
 0x3af   : > { %v3605_v5 = vpop.eup %3604 }
 0x3b0   : > { %v882_v31 = vpop.permute.xlu1 %881  ;;  %v747_v61 = vmul.f32 %v3605_v5, %v4241_v63  ;;  %v1316_v63 = vpop.permute.xlu0 %1315 }
 0x3b3   : > { %v3607_v12 = vpop.eup %3606 }
 0x3b4   : > { %v3433_v34 = vpop.permute.xlu1 %3432  ;;  %v746_v37 = vmul.f32 %v3607_v12, %v4247_v20  ;;  %v1320_v53 = vpop.permute.xlu0 %1319 }
 0x3b5   : > { %v3435_v52 = vunpack.i.h.bf16 %v3433_v34  ;;  %v3434_v40 = vunpack.i.l.bf16 %v3433_v34 }
 0x3b6   : > { %2880 = vmatprep.mubr.msk.f32.mxu1 %vm659_vm3, %v746_v37 }
 0x3b7   : > { %v3257_v13 = vpack.c.bf16 %v3435_v52, %v3434_v40  ;;  %2881 = vmatmul.mubr.msk.f32.gmra.mrb[14].mxu1 %vm659_vm3, %v747_v61 }
 0x3b8   : > { %v888_v9 = vpop.permute.xlu1 %887  ;;  %2899 = vmatprep.mubr.msk.f32.mxu1 %vm489_vm0, %v878_v1  ;;  %v1324_v59 = vpop.permute.xlu0 %1323 }
 0x3b9   : > { %3259 = vmatprep.subr.msk.bf16.mxu0 %vm4023_vm1, %v3257_v13 }
 0x3ba   : > { %3262 = vmatpush3.bf16.xpose.msk.msra.mxu0 %vm4023_vm1, %v3257_v13 }
 0x3bb   : > { %2900 = vmatmul.mubr.msk.f32.vlgmr.msra.gmra.mrb[16].mxu1 %vm489_vm0, %v880_v3 }
 0x3bc   : > { %v892_v20 = vpop.permute.xlu1 %891  ;;  %2902 = vmatprep.mubr.msk.f32.mxu1 %vm489_vm0, %v882_v31 }
 0x3bf   : > { %2903 = vmatmul.mubr.msk.f32.gmra.mrb[18].mxu1 %vm489_vm0, %v884_v22 }
 0x3c0   : > { %v1314_v50 = vpop.permute.xlu1 %1313  ;;  %2905 = vmatprep.mubr.msk.f32.mxu1 %vm489_vm0, %v886_v42 }
 0x3c1   : > { %2956 = vmatmul.mubr.msk.f32.vlgmr.msra.gmra.mrb[24].mxu0 %vm489_vm0, %v1314_v50 }
 0x3c2   : > { %2958 = vmatprep.mubr.msk.f32.mxu0 %vm489_vm0, %v1316_v63 }
 0x3c3   : > { %2906 = vmatmul.mubr.msk.f32.gmra.mrb[20].mxu1 %vm489_vm0, %v888_v9 }
 0x3c4   : > { %v1318_v55 = vpop.permute.xlu1 %1317  ;;  %2908 = vmatprep.mubr.msk.f32.mxu1 %vm489_vm0, %v890_v25 }
 0x3c5   : > { %2959 = vmatmul.mubr.msk.f32.gmra.mrb[26].mxu0 %vm489_vm0, %v1318_v55 }
 0x3c6   : > { %2961 = vmatprep.mubr.msk.f32.mxu0 %vm489_vm0, %v1320_v53 }
 0x3c7   : > { %2909 = vmatmul.mubr.msk.f32.gmra.mrb[22].mxu1 %vm489_vm0, %v892_v20 }
 0x3c8   : > { %v1322_v56 = vpop.permute.xlu1 %1321 }
 0x3c9   : > { %2962 = vmatmul.mubr.msk.f32.gmra.mrb[28].mxu0 %vm489_vm0, %v1322_v56 }
 0x3ca   : > { %2964 = vmatprep.mubr.msk.f32.mxu0 %vm489_vm0, %v1324_v59 }
 0x3cc   : > { %v1326_v62 = vpop.permute.xlu1 %1325 }
 0x3cd   : > { %2965 = vmatmul.mubr.msk.f32.gmra.mrb[30].mxu0 %vm489_vm0, %v1326_v62 }
 0x41c   : > { %v4338_v16 = vpop.f32.mrb[8].mxu1 }
 0x41d   : > { %v4340_v0 = vpop.f32.mrb[9].mxu1 }
 0x451   : > { %v4342_v1 = vpop.f32.mrb[10].mxu1 }
 0x452   : > { %v4344_v2 = vpop.f32.mrb[11].mxu1 }
 0x455   : > { %v4346_v7 = vpop.f32.mrb[12].mxu1 }
 0x456   : > { %4959 = vst [vmem:[#allocation5_spill] sm:$0xff] %v4346_v7  ;;  %v4348_v8 = vpop.f32.mrb[13].mxu1 }
 0x457   : > { %4960 = vst [vmem:[#allocation6_spill] sm:$0xff] %v4348_v8 }
 0x48a   : > { %v4350_v10 = vpop.f32.mrb[14].mxu1 }
 0x48b   : > { %4961 = vst [vmem:[#allocation7_spill] sm:$0xff] %v4350_v10  ;;  %v4352_v11 = vpop.f32.mrb[15].mxu1 }
 0x48c   : > { %4962 = vst [vmem:[#allocation8_spill] sm:$0xff] %v4352_v11 }
 0x48e   : > { %v2901_v57 = vpop.f32.mrb[16].mxu1 }
 0x48f   : > { %v1007_v14 = vpop.f32.mrb[17].mxu1 }
 0x492   : > { %v2904_v15 = vpop.f32.mrb[18].mxu1 }
 0x493   : > { %v1017_v46 = vpop.f32.mrb[19].mxu1 }
 0x494   : > { %v2957_v18 = vpop.f32.mrb[24].mxu0 }
 0x495   : > { %v1481_v22 = vmul.f32 0.17677669, %v2957_v18  ;;  %v1441_v42 = vpop.f32.mrb[25].mxu0 }
 0x496   : > { %v1480_v25 = vmul.f32 0.17677669, %v1441_v42  ;;  %v4354_v27 = vpop.f32.mrb[20].mxu1 }
 0x497   : > { %v1027_v49 = vpop.f32.mrb[21].mxu1  ;;  %v4359_v28 = vsel %vm482_vm2, %v1481_v22, -inf }
 0x498   : > { %v2960_v3 = vpop.f32.mrb[26].mxu0  ;;  %v1499_v31 = vsel %vm659_vm3, %v4359_v28, -inf  ;;  %v4366_v5 = vsel %vm481_vm4, %v1480_v25, -inf }
 0x499   : > { %v1483_v12 = vmul.f32 0.17677669, %v2960_v3  ;;  %1500 = vmax.xlane.f32.xlu1 %v1499_v31  ;;  %v1451_v34 = vpop.f32.mrb[27].mxu0  ;;  %v1496_v37 = vsel %vm659_vm3, %v4366_v5, -inf }
 0x49a   : > { %v1482_v52 = vmul.f32 0.17677669, %v1451_v34  ;;  %1497 = vmax.xlane.f32.xlu0 %v1496_v37  ;;  %v2910_v40 = vpop.f32.mrb[22].mxu1 }
 0x49b   : > { %v1037_v61 = vpop.f32.mrb[23].mxu1  ;;  %v4373_v13 = vsel %vm484_vm5, %v1483_v12, -inf }
 0x49c   : > { %v2963_v9 = vpop.f32.mrb[28].mxu0  ;;  %v1505_v20 = vsel %vm659_vm3, %v4373_v13, -inf  ;;  %v4380_v63 = vsel %vm483_vm6, %v1482_v52, -inf }
 0x49d   : > { %v1485_v50 = vmul.f32 0.17677669, %v2963_v9  ;;  %1506 = vmax.xlane.f32.xlu1 %v1505_v20  ;;  %v1461_v53 = vpop.f32.mrb[29].mxu0  ;;  %v1502_v55 = vsel %vm659_vm3, %v4380_v63, -inf  ;;  %v1047_v9 = vmul.f32 0.17677669, %v2901_v57 }
 0x49e   : > { %v1484_v56 = vmul.f32 0.17677669, %v1461_v53  ;;  %1503 = vmax.xlane.f32.xlu0 %v1502_v55  ;;  %v1046_v20 = vmul.f32 0.17677669, %v1007_v14  ;;  %v1049_v53 = vmul.f32 0.17677669, %v2904_v15 }
 0x49f   : > { %v4387_v59 = vsel %vm486_vm8, %v1485_v50, -inf  ;;  %v4419_v50 = vsel %vm482_vm2, %v1047_v9, -inf  ;;  %v1048_v57 = vmul.f32 0.17677669, %v1017_v46  ;;  %v1052_v46 = vmul.f32 0.17677669, %v1037_v61 }
 0x4a0   : > { %v2966_v62 = vpop.f32.mrb[30].mxu0  ;;  %v1511_v18 = vsel %vm659_vm3, %v4387_v59, -inf  ;;  %v4394_v22 = vsel %vm485_vm7, %v1484_v56, -inf  ;;  %v4424_v55 = vsel %vm481_vm4, %v1046_v20, -inf  ;;  %v1065_v56 = vsel %vm659_vm3, %v4419_v50, -inf }
 0x4a1   : > { %v1487_v42 = vmul.f32 0.17677669, %v2966_v62  ;;  %1512 = vmax.xlane.f32.xlu1 %v1511_v18  ;;  %v1471_v25 = vpop.f32.mrb[31].mxu0  ;;  %v1508_v3 = vsel %vm659_vm3, %v4394_v22, -inf  ;;  %v1062_v62 = vsel %vm659_vm3, %v4424_v55, -inf  ;;  %v4433_v14 = vsel %vm484_vm5, %v1049_v53, -inf }
 0x4a2   : > { %v1486_v31 = vmul.f32 0.17677669, %v1471_v25  ;;  %1509 = vmax.xlane.f32.xlu0 %v1508_v3  ;;  %v1071_v15 = vsel %vm659_vm3, %v4433_v14, -inf  ;;  %v1050_v18 = vmul.f32 0.17677669, %v1027_v49  ;;  %v4454_v49 = vsel %vm487_vm9, %v1052_v46, -inf }
 0x4a3   : > { %v4401_v12 = vsel %vm488_vm10, %v1487_v42, -inf  ;;  %v4440_v42 = vsel %vm483_vm6, %v1048_v57, -inf  ;;  %v1051_v61 = vmul.f32 0.17677669, %v4354_v27 }
 0x4a4   : > { %v1517_v34 = vsel %vm659_vm3, %v4401_v12, -inf  ;;  %v4408_v37 = vsel %vm487_vm9, %v1486_v31, -inf  ;;  %v1068_v25 = vsel %vm659_vm3, %v4440_v42, -inf  ;;  %v4447_v3 = vsel %vm485_vm7, %v1050_v18, -inf }
 0x4a5   : > { %1518 = vmax.xlane.f32.xlu1 %v1517_v34  ;;  %v1514_v52 = vsel %vm659_vm3, %v4408_v37, -inf  ;;  %v1074_v31 = vsel %vm659_vm3, %v4447_v3, -inf  ;;  %v1080_v34 = vsel %vm659_vm3, %v4454_v49, -inf  ;;  %v4466_v9 = vsel %vm486_vm8, %v1051_v61, -inf }
 0x4a6   : > { %1515 = vmax.xlane.f32.xlu0 %v1514_v52  ;;  %v1053_v52 = vmul.f32 0.17677669, %v2910_v40  ;;  %v1077_v20 = vsel %vm659_vm3, %v4466_v9, -inf }
 0x4a8   : > { %v4473_v53 = vsel %vm488_vm10, %v1053_v52, -inf }
 0x4b6   : > { %3437 = vrot.lane.b32.xlu1 %v4174_v33, %s3769_s28 }
 0x4bc   : > { %3442 = vrot.lane.b32.xlu0 %v4176_v39, %s3769_s28 }
 0x4da   : > { %1066 = vmax.xlane.f32.xlu1 %v1065_v56  ;;  %v1083_v56 = vsel %vm659_vm3, %v4473_v53, -inf }
 0x4db   : > { %1063 = vmax.xlane.f32.xlu0 %v1062_v62 }
 0x4df   : > { %1072 = vmax.xlane.f32.xlu0 %v1071_v15 }
 0x4e3   : > { %1069 = vmax.xlane.f32.xlu0 %v1068_v25 }
 0x4e7   : > { %1075 = vmax.xlane.f32.xlu0 %v1074_v31 }
 0x4eb   : > { %3447 = vrot.lane.b32.xlu1 %v4178_v48, %s3769_s28  ;;  %1081 = vmax.xlane.f32.xlu0 %v1080_v34 }
 0x501   : > { %3452 = vrot.lane.b32.xlu0 %v4182_v54, %s3769_s28 }
 0x50f   : > { %1078 = vmax.xlane.f32.xlu1 %v1077_v20 }
 0x513   : > { %1084 = vmax.xlane.f32.xlu1 %v1083_v56 }
 0x526   : > { %v1501_v27 = vpop.xlane.xlu1 %1500 }
 0x527   : > { %v1521_v40 = vsub.f32 %v4359_v28, %v1501_v27  ;;  %v1498_v62 = vpop.xlane.xlu0 %1497 }
 0x528   : > { %v1520_v57 = vsub.f32 %v4366_v5, %v1498_v62 }
 0x529   : > { %v1530_v15 = vmul.f32 1.442695, %v1521_v40 }
 0x52a   : > { %v1528_v18 = vmul.f32 1.442695, %v1520_v57  ;;  %v1507_v25 = vpop.xlane.xlu1 %1506 }
 0x52b   : > { %3608 = vpow2.f32 %v1530_v15  ;;  %v1504_v46 = vpop.xlane.xlu0 %1503 }
 0x52c   : > { %3610 = vpow2.f32 %v1528_v18 }
 0x52e   : > { %v1513_v31 = vpop.xlane.xlu1 %1512 }
 0x52f   : > { %v1510_v34 = vpop.xlane.xlu0 %1509  ;;  %v1525_v8 = vsub.f32 %v4387_v59, %v1513_v31 }
 0x532   : > { %v4479_v61 = vpop.xlane.xlu1 %1518 }
 0x533   : > { %v4481_v52 = vpop.xlane.xlu0 %1515 }
 0x535   : > { %v4483_v20 = vpop.eup %3608 }
 0x536   : > { %v4485_v56 = vpop.eup %3610  ;;  %v3438_v28 = vpop.permute.xlu1 %3437  ;;  %v1547_v5 = vsel %vm659_vm3, %v4483_v20, 0.0 }
 0x537   : > { %v3440_v27 = vunpack.i.h.bf16 %v3438_v28  ;;  %v3439_v40 = vunpack.i.l.bf16 %v3438_v28  ;;  %v3443_v62 = vpop.permute.xlu0 %3442  ;;  %1548 = vadd.xlane.f32.xlu0 %v1547_v5  ;;  %v1544_v57 = vsel %vm659_vm3, %v4485_v56, 0.0  ;;  %v1523_v28 = vsub.f32 %v4373_v13, %v1507_v25 }
 0x538   : > { %v3445_v15 = vunpack.i.h.bf16 %v3443_v62  ;;  %v3444_v18 = vunpack.i.l.bf16 %v3443_v62  ;;  %1545 = vadd.xlane.f32.xlu1 %v1544_v57 }
 0x539   : > { %v3223_v10 = vpack.c.bf16 %v3440_v27, %v3439_v40  ;;  %v1534_v5 = vmul.f32 1.442695, %v1523_v28 }
 0x53a   : > { %v3227_v11 = vpack.c.bf16 %v3445_v15, %v3444_v18 }
 0x53b   : > { %3224 = vmatprep.subr.bf16.mxu1 %v3223_v10  ;;  %3612 = vpow2.f32 %v1534_v5 }
 0x53c   : > { %3226 = vmatpush3.bf16.msra.mxu1 %v3223_v10  ;;  %v1522_v10 = vsub.f32 %v4380_v63, %v1504_v46 }
 0x53d   : > { %3228 = vmatprep.subr.bf16.mxu1 %v3227_v11 }
 0x53e   : > { %v1532_v27 = vmul.f32 1.442695, %v1522_v10  ;;  %v1538_v10 = vmul.f32 1.442695, %v1525_v8 }
 0x540   : > { %3230 = vmatpush3.bf16.msra.mxu1 %v3227_v11  ;;  %3614 = vpow2.f32 %v1532_v27  ;;  %v1524_v11 = vsub.f32 %v4394_v22, %v1510_v34 }
 0x542   : > { %v1536_v13 = vmul.f32 1.442695, %v1524_v11 }
 0x545   : > { %v4502_v62 = vpop.eup %3612 }
 0x546   : > { %v1553_v63 = vsel %vm659_vm3, %v4502_v62, 0.0 }
 0x549   : > { %3457 = vrot.lane.b32.xlu1 %v4174_v33, %s3770_s29 }
 0x54a   : > { %v4510_v31 = vpop.eup %3614 }
 0x54d   : > { %3467 = vrot.lane.b32.xlu1 %v4178_v48, %s3770_s29  ;;  %3462 = vrot.lane.b32.xlu0 %v4176_v39, %s3770_s29 }
 0x551   : > { %3472 = vrot.lane.b32.xlu1 %v4182_v54, %s3770_s29 }
 0x567   : > { %v1067_v40 = vpop.xlane.xlu1 %1066 }
 0x568   : > { %v1087_v57 = vsub.f32 %v4419_v50, %v1067_v40  ;;  %v1064_v15 = vpop.xlane.xlu0 %1063  ;;  %v1550_v40 = vsel %vm659_vm3, %v4510_v31, 0.0 }
 0x569   : > { %v1086_v18 = vsub.f32 %v4424_v55, %v1064_v15 }
 0x56a   : > { %v1096_v7 = vmul.f32 1.442695, %v1087_v57 }
 0x56b   : > { %v1094_v25 = vmul.f32 1.442695, %v1086_v18  ;;  %v3448_v28 = vpop.permute.xlu1 %3447 }
 0x56c   : > { %3616 = vpow2.f32 %v1096_v7  ;;  %v3450_v46 = vunpack.i.h.bf16 %v3448_v28  ;;  %v3449_v22 = vunpack.i.l.bf16 %v3448_v28  ;;  %v1073_v34 = vpop.xlane.xlu0 %1072  ;;  %1554 = vadd.xlane.f32.xlu0 %v1553_v63 }
 0x56d   : > { %3618 = vpow2.f32 %v1094_v25  ;;  %v1089_v50 = vsub.f32 %v4433_v14, %v1073_v34 }
 0x56e   : > { %v3231_v5 = vpack.c.bf16 %v3450_v46, %v3449_v22  ;;  %3620 = vpow2.f32 %v1536_v13 }
 0x56f   : > { %v1100_v55 = vmul.f32 1.442695, %v1089_v50 }
 0x570   : > { %3232 = vmatprep.subr.bf16.mxu1 %v3231_v5  ;;  %v1070_v59 = vpop.xlane.xlu0 %1069 }
 0x571   : > { %3622 = vpow2.f32 %v1100_v55  ;;  %v1088_v27 = vsub.f32 %v4440_v42, %v1070_v59  ;;  %3234 = vmatpush3.bf16.msra.mxu1 %v3231_v5 }
 0x572   : > { %3624 = vpow2.f32 %v1538_v10 }
 0x573   : > { %v1098_v7 = vmul.f32 1.442695, %v1088_v27 }
 0x574   : > { %v1076_v11 = vpop.xlane.xlu0 %1075 }
 0x575   : > { %3626 = vpow2.f32 %v1098_v7  ;;  %v1090_v14 = vsub.f32 %v4447_v3, %v1076_v11  ;;  %1551 = vadd.xlane.f32.xlu1 %v1550_v40  ;;  %v1526_v11 = vsub.f32 %v4408_v37, %v4481_v52 }
 0x576   : > { %v4516_v8 = vpop.eup %3616 }
 0x577   : > { %v4518_v57 = vpop.eup %3618  ;;  %v1102_v15 = vmul.f32 1.442695, %v1090_v14  ;;  %v1113_v18 = vsel %vm659_vm3, %v4516_v8, 0.0 }
 0x578   : > { %v1082_v42 = vpop.xlane.xlu0 %1081  ;;  %v1110_v13 = vsel %vm659_vm3, %v4518_v57, 0.0  ;;  %v4524_v25 = vpop.eup %3620 }
 0x579   : > { %3628 = vpow2.f32 %v1102_v15  ;;  %1114 = vadd.xlane.f32.xlu1 %v1113_v18  ;;  %1111 = vadd.xlane.f32.xlu0 %v1110_v13  ;;  %v1556_v63 = vsel %vm659_vm3, %v4524_v25, 0.0  ;;  %v1527_v15 = vsub.f32 %v4401_v12, %v4479_v61  ;;  %v1540_v18 = vmul.f32 1.442695, %v1526_v11 }
 0x57a   : > { %v1092_v13 = vsub.f32 %v4454_v49, %v1082_v42 }
 0x57b   : > { %v4526_v28 = vpop.eup %3622 }
 0x57c   : > { %v3453_v3 = vpop.permute.xlu0 %3452  ;;  %v1119_v46 = vsel %vm659_vm3, %v4526_v28, 0.0  ;;  %v4532_v22 = vpop.eup %3624 }
 0x57d   : > { %v3455_v34 = vunpack.i.h.bf16 %v3453_v3  ;;  %v3454_v50 = vunpack.i.l.bf16 %v3453_v3  ;;  %1557 = vadd.xlane.f32.xlu1 %v1556_v63  ;;  %1120 = vadd.xlane.f32.xlu0 %v1119_v46  ;;  %v1559_v55 = vsel %vm659_vm3, %v4532_v22, 0.0 }
 0x57f   : > { %v4534_v5 = vpop.eup %3626  ;;  %v3235_v10 = vpack.c.bf16 %v3455_v34, %v3454_v50  ;;  %v1542_v34 = vmul.f32 1.442695, %v1527_v15  ;;  %v1106_v50 = vmul.f32 1.442695, %v1092_v13 }
 0x580   : > { %v1116_v59 = vsel %vm659_vm3, %v4534_v5, 0.0 }
 0x581   : > { %1560 = vadd.xlane.f32.xlu1 %v1559_v55  ;;  %1117 = vadd.xlane.f32.xlu0 %v1116_v59 }
 0x582   : > { %3236 = vmatprep.subr.bf16.mxu1 %v3235_v10 }
 0x583   : > { %v4540_v27 = vpop.eup %3628  ;;  %3238 = vmatpush3.bf16.msra.mxu1 %v3235_v10 }
 0x584   : > { %v1122_v7 = vsel %vm659_vm3, %v4540_v27, 0.0 }
 0x585   : > { %1123 = vadd.xlane.f32.xlu0 %v1122_v7 }
 0x59c   : > { %v1079_v40 = vpop.xlane.xlu1 %1078 }
 0x59d   : > { %v1091_v14 = vsub.f32 %v4466_v9, %v1079_v40 }
 0x59f   : > { %v1104_v3 = vmul.f32 1.442695, %v1091_v14 }
 0x5a0   : > { %v1085_v63 = vpop.xlane.xlu1 %1084 }
 0x5a1   : > { %3630 = vpow2.f32 %v1104_v3  ;;  %v1093_v46 = vsub.f32 %v4473_v53, %v1085_v63 }
 0x5a2   : > { %3632 = vpow2.f32 %v1540_v18 }
 0x5a3   : > { %v1108_v10 = vmul.f32 1.442695, %v1093_v46 }
 0x5a5   : > { %3634 = vpow2.f32 %v1108_v10 }
 0x5a6   : > { %3636 = vpow2.f32 %v1542_v34 }
 0x5a7   : > { %3638 = vpow2.f32 %v1106_v50 }
 0x5ab   : > { %v4551_v37 = vpop.eup %3630 }
 0x5ac   : > { %v1125_v12 = vsel %vm659_vm3, %v4551_v37, 0.0  ;;  %v4555_v9 = vpop.eup %3632 }
 0x5ad   : > { %1126 = vadd.xlane.f32.xlu1 %v1125_v12  ;;  %v1562_v53 = vsel %vm659_vm3, %v4555_v9, 0.0 }
 0x5af   : > { %v4557_v49 = vpop.eup %3634 }
 0x5b0   : > { %v4559_v61 = vpop.eup %3636  ;;  %v1131_v52 = vsel %vm659_vm3, %v4557_v49, 0.0 }
 0x5b1   : > { %v4565_v42 = vpop.eup %3638  ;;  %1563 = vadd.xlane.f32.xlu1 %v1562_v53  ;;  %1132 = vadd.xlane.f32.xlu0 %v1131_v52  ;;  %v1565_v55 = vsel %vm659_vm3, %v4559_v61, 0.0 }
 0x5b2   : > { %v1128_v59 = vsel %vm659_vm3, %v4565_v42, 0.0 }
 0x5b5   : > { %1566 = vadd.xlane.f32.xlu1 %v1565_v55  ;;  %1129 = vadd.xlane.f32.xlu0 %v1128_v59 }
 0x5c5   : > { %v4571_v7 = vpop.xlane.xlu1 %1545 }
 0x5c6   : > { %3482 = vrot.lane.b32.xlu1 %v4037_v29, %s3771_s30 }
 0x5c9   : > { %v3458_v11 = vpop.permute.xlu1 %3457 }
 0x5ca   : > { %v3460_v40 = vunpack.i.h.bf16 %v3458_v11  ;;  %v3459_v14 = vunpack.i.l.bf16 %v3458_v11  ;;  %3492 = vrot.lane.b32.xlu1 %v4057_v41, %s3771_s30 }
 0x5cb   : > { %3477 = vrot.lane.b32.xlu0 %v4027_v23, %s3771_s30 }
 0x5cc   : > { %v3263_v15 = vpack.c.bf16 %v3460_v40, %v3459_v14 }
 0x5cd   : > { %v3468_v23 = vpop.permute.xlu1 %3467 }
 0x5ce   : > { %1739 = vrot.lane.b32.xlu1 %v4019_v19, %s3771_s30  ;;  %3264 = vmatprep.subr.bf16.mxu1 %v3263_v15  ;;  %v1549_v19 = vpop.xlane.xlu0 %1548  ;;  %v3470_v50 = vunpack.i.h.bf16 %v3468_v23  ;;  %v3469_v10 = vunpack.i.l.bf16 %v3468_v23 }
 0x5cf   : > { %3487 = vrot.lane.b32.xlu0 %v4047_v35, %s3771_s30 }
 0x5d0   : > { %v3271_v52 = vpack.c.bf16 %v3470_v50, %v3469_v10 }
 0x5d1   : > { %v3473_v29 = vpop.permute.xlu1 %3472 }
 0x5d2   : > { %1743 = vrot.lane.b32.xlu1 %v4035_v26, %s3771_s30  ;;  %v3463_v26 = vpop.permute.xlu0 %3462  ;;  %v3475_v55 = vunpack.i.h.bf16 %v3473_v29  ;;  %v3474_v59 = vunpack.i.l.bf16 %v3473_v29 }
 0x5d3   : > { %1737 = vrot.lane.b32.xlu0 %v4015_v17, %s3771_s30  ;;  %v3465_v13 = vunpack.i.h.bf16 %v3463_v26  ;;  %v3464_v3 = vunpack.i.l.bf16 %v3463_v26 }
 0x5d4   : > { %v3275_v40 = vpack.c.bf16 %v3475_v55, %v3474_v59 }
 0x5d5   : > { %v3267_v34 = vpack.c.bf16 %v3465_v13, %v3464_v3 }
 0x5d6   : > { %1747 = vrot.lane.b32.xlu1 %v4045_v32, %s3771_s30 }
 0x5d7   : > { %1741 = vrot.lane.b32.xlu0 %v4029_v24, %s3771_s30 }
 0x5da   : > { %1751 = vrot.lane.b32.xlu1 %v4055_v38, %s3771_s30 }
 0x5db   : > { %1745 = vrot.lane.b32.xlu0 %v4039_v30, %s3771_s30 }
 0x5df   : > { %1749 = vrot.lane.b32.xlu0 %v4049_v36, %s3771_s30 }
 0x5f9   : > { %v4597_v17 = vpop.xlane.xlu0 %1554 }
 0x602   : > { %v1552_v35 = vpop.xlane.xlu1 %1551 }
 0x606   : > { %v1115_v32 = vpop.xlane.xlu1 %1114  ;;  %v1112_v41 = vpop.xlane.xlu0 %1111 }
 0x607   : > { %3640 = vrcp.f32 %v1115_v32 }
 0x608   : > { %3642 = vrcp.f32 %v1112_v41 }
 0x60a   : > { %v1121_v24 = vpop.xlane.xlu0 %1120 }
 0x60b   : > { %3644 = vrcp.f32 %v1121_v24 }
 0x60e   : > { %v1118_v18 = vpop.xlane.xlu0 %1117 }
 0x60f   : > { %3646 = vrcp.f32 %v1118_v18 }
 0x611   : > { %v3641_v38 = vpop.eup %3640 }
 0x612   : > { %v3643_v30 = vpop.eup %3642  ;;  %v1143_v36 = vmul.f32 %v3641_v38, %v4516_v8  ;;  %v1124_v63 = vpop.xlane.xlu0 %1123 }
 0x613   : > { %3648 = vrcp.f32 %v1124_v63  ;;  %v1142_v46 = vmul.f32 %v3643_v30, %v4518_v57 }
 0x615   : > { %2927 = vmatprep.mubr.msk.f32.mxu1 %vm659_vm3, %v1142_v46  ;;  %v3645_v12 = vpop.eup %3644 }
 0x616   : > { %2928 = vmatmul.mubr.msk.f32.vlgmr.msra.gmra.mrb[24].mxu1 %vm659_vm3, %v1143_v36  ;;  %v1145_v57 = vmul.f32 %v3645_v12, %v4526_v28 }
 0x617   : > { %3266 = vmatpush3.bf16.msra.mxu1 %v3263_v15  ;;  %v1558_v15 = vpop.xlane.xlu1 %1557 }
 0x618   : > { %3268 = vmatprep.subr.bf16.mxu1 %v3267_v34 }
 0x619   : > { %v3647_v53 = vpop.eup %3646 }
 0x61a   : > { %v1144_v8 = vmul.f32 %v3647_v53, %v4534_v5 }
 0x61b   : > { %3270 = vmatpush3.bf16.msra.mxu1 %v3267_v34  ;;  %v1561_v23 = vpop.xlane.xlu1 %1560 }
 0x61c   : > { %3272 = vmatprep.subr.bf16.mxu1 %v3271_v52  ;;  %2930 = vmatprep.mubr.msk.f32.mxu1 %vm659_vm3, %v1144_v8 }
 0x61d   : > { %v3649_v11 = vpop.eup %3648  ;;  %2931 = vmatmul.mubr.msk.f32.gmra.mrb[26].mxu1 %vm659_vm3, %v1145_v57 }
 0x61e   : > { %v1146_v14 = vmul.f32 %v3649_v11, %v4540_v27 }
 0x61f   : > { %3274 = vmatpush3.bf16.msra.mxu1 %v3271_v52 }
 0x620   : > { %3276 = vmatprep.subr.bf16.mxu1 %v3275_v40  ;;  %2933 = vmatprep.mubr.msk.f32.mxu1 %vm659_vm3, %v1146_v14 }
 0x623   : > { %3278 = vmatpush3.bf16.msra.mxu1 %v3275_v40 }
 0x63a   : > { %v1127_v26 = vpop.xlane.xlu1 %1126 }
 0x63b   : > { %3650 = vrcp.f32 %v1127_v26 }
 0x63c   : > { %3652 = vrcp.f32 %v4571_v7 }
 0x63e   : > { %v1133_v5 = vpop.xlane.xlu0 %1132  ;;  %v1564_v29 = vpop.xlane.xlu1 %1563 }
 0x63f   : > { %3654 = vrcp.f32 %v1133_v5 }
 0x642   : > { %v1130_v28 = vpop.xlane.xlu0 %1129  ;;  %v1567_v38 = vpop.xlane.xlu1 %1566 }
 0x643   : > { %3656 = vrcp.f32 %v1130_v28 }
 0x644   : > { %3658 = vrcp.f32 %v1549_v19 }
 0x645   : > { %v3651_v32 = vpop.eup %3650  ;;  %3660 = vrcp.f32 %v1552_v35 }
 0x646   : > { %v3478_v41 = vpop.permute.xlu0 %3477  ;;  %v1147_v27 = vmul.f32 %v3651_v32, %v4551_v37  ;;  %3662 = vrcp.f32 %v4597_v17  ;;  %v3653_v7 = vpop.eup %3652 }
 0x647   : > { %v3480_v24 = vunpack.i.h.bf16 %v3478_v41  ;;  %v3479_v18 = vunpack.i.l.bf16 %v3478_v41  ;;  %3664 = vrcp.f32 %v1558_v15  ;;  %v3483_v36 = vpop.permute.xlu1 %3482  ;;  %v1576_v63 = vmul.f32 %v3653_v7, %v4485_v56 }
 0x648   : > { %2934 = vmatmul.mubr.msk.f32.gmra.mrb[28].mxu1 %vm659_vm3, %v1147_v27  ;;  %3666 = vrcp.f32 %v1561_v23  ;;  %v3485_v46 = vunpack.i.h.bf16 %v3483_v36  ;;  %v3484_v34 = vunpack.i.l.bf16 %v3483_v36 }
 0x649   : > { %v3279_v30 = vpack.c.bf16 %v3480_v24, %v3479_v18  ;;  %v3655_v13 = vpop.eup %3654  ;;  %3668 = vrcp.f32 %v1564_v29 }
 0x64a   : > { %v1149_v19 = vmul.f32 %v3655_v13, %v4557_v49  ;;  %3670 = vrcp.f32 %v1567_v38  ;;  %v3285_v49 = vpack.c.bf16 %v3485_v46, %v3484_v34  ;;  %v3488_v53 = vpop.permute.xlu0 %3487 }
 0x64b   : > { %3281 = vmatprep.subr.msk.bf16.mxu1 %vm4023_vm1, %v3279_v30  ;;  %v3489_v59 = vunpack.i.l.bf16 %v3488_v53  ;;  %v3493_v14 = vpop.permute.xlu1 %3492 }
 0x64c   : > { %v3494_v15 = vunpack.i.l.bf16 %v3493_v14 }
 0x64d   : > { %v3657_v3 = vpop.eup %3656 }
 0x64e   : > { %v1148_v37 = vmul.f32 %v3657_v3, %v4565_v42  ;;  %v3659_v35 = vpop.eup %3658 }
 0x64f   : > { %v3661_v17 = vpop.eup %3660  ;;  %v1577_v50 = vmul.f32 %v3659_v35, %v4483_v20  ;;  %v1740_v23 = vpop.permute.xlu1 %1739 }
 0x650   : > { %2936 = vmatprep.mubr.msk.f32.mxu1 %vm659_vm3, %v1148_v37  ;;  %v3663_v10 = vpop.eup %3662  ;;  %v1578_v42 = vmul.f32 %v3661_v17, %v4510_v31  ;;  %v3490_v31 = vunpack.i.h.bf16 %v3488_v53 }
 0x651   : > { %2937 = vmatmul.mubr.msk.f32.gmra.mrb[30].mxu1 %vm659_vm3, %v1149_v19  ;;  %v3665_v12 = vpop.eup %3664  ;;  %v1579_v56 = vmul.f32 %v3663_v10, %v4502_v62 }
 0x652   : > { %2983 = vmatprep.mubr.msk.f32.mxu1 %vm659_vm3, %v1576_v63  ;;  %v3667_v52 = vpop.eup %3666  ;;  %v1580_v20 = vmul.f32 %v3665_v12, %v4524_v25  ;;  %v3291_v40 = vpack.c.bf16 %v3490_v31, %v3489_v59  ;;  %v3495_v25 = vunpack.i.h.bf16 %v3493_v14 }
 0x653   : > { %v3669_v55 = vpop.eup %3668  ;;  %v1581_v8 = vmul.f32 %v3667_v52, %v4532_v22  ;;  %v1738_v22 = vpop.permute.xlu0 %1737 }
 0x654   : > { %v3671_v57 = vpop.eup %3670  ;;  %v1582_v11 = vmul.f32 %v3669_v55, %v4555_v9  ;;  %v3297_v9 = vpack.c.bf16 %v3495_v25, %v3494_v15 }
 0x655   : > { %2984 = vmatmul.mubr.msk.f32.vlgmr.msra.gmra.mrb[32].mxu1 %vm659_vm3, %v1577_v50  ;;  %v1583_v62 = vmul.f32 %v3671_v57, %v4559_v61  ;;  %v1744_v61 = vpop.permute.xlu1 %1743 }
 0x656   : > { %3284 = vmatpush3.bf16.xpose.msk.msra.mxu1 %vm4023_vm1, %v3279_v30  ;;  %2986 = vmatprep.mubr.msk.f32.mxu1 %vm659_vm3, %v1578_v42 }
 0x657   : > { %3287 = vmatprep.subr.msk.bf16.mxu1 %vm4023_vm1, %v3285_v49  ;;  %v1742_v26 = vpop.permute.xlu0 %1741 }
 0x659   : > { %2987 = vmatmul.mubr.msk.f32.gmra.mrb[34].mxu1 %vm659_vm3, %v1579_v56  ;;  %v1748_v28 = vpop.permute.xlu1 %1747 }
 0x65a   : > { %2989 = vmatprep.mubr.msk.f32.mxu1 %vm659_vm3, %v1580_v20 }
 0x65b   : > { %v1746_v5 = vpop.permute.xlu0 %1745 }
 0x65d   : > { %2990 = vmatmul.mubr.msk.f32.gmra.mrb[36].mxu1 %vm659_vm3, %v1581_v8  ;;  %v1752_v32 = vpop.permute.xlu1 %1751 }
 0x65e   : > { %3290 = vmatpush3.bf16.xpose.msk.msra.mxu1 %vm4023_vm1, %v3285_v49  ;;  %2992 = vmatprep.mubr.msk.f32.mxu1 %vm659_vm3, %v1582_v11 }
 0x65f   : > { %3293 = vmatprep.subr.msk.bf16.mxu1 %vm4023_vm1, %v3291_v40  ;;  %v1750_v29 = vpop.permute.xlu0 %1749 }
 0x661   : > { %2993 = vmatmul.mubr.msk.f32.gmra.mrb[38].mxu1 %vm659_vm3, %v1583_v62 }
 0x662   : > { %3011 = vmatprep.mubr.msk.f32.mxu1 %vm489_vm0, %v1738_v22 }
 0x666   : > { %3296 = vmatpush3.bf16.xpose.msk.msra.mxu1 %vm4023_vm1, %v3291_v40 }
 0x667   : > { %3299 = vmatprep.subr.msk.bf16.mxu1 %vm4023_vm1, %v3297_v9 }
 0x66e   : > { %3302 = vmatpush3.bf16.xpose.msk.msra.mxu1 %vm4023_vm1, %v3297_v9 }
 0x675   : > { %3012 = vmatmul.mubr.msk.f32.vlgmr.msra.gmra.mrb[40].mxu1 %vm489_vm0, %v1740_v23 }
 0x676   : > { %3014 = vmatprep.mubr.msk.f32.mxu1 %vm489_vm0, %v1742_v26 }
 0x679   : > { %3015 = vmatmul.mubr.msk.f32.gmra.mrb[42].mxu1 %vm489_vm0, %v1744_v61 }
 0x67a   : > { %3017 = vmatprep.mubr.msk.f32.mxu1 %vm489_vm0, %v1746_v5 }
 0x67d   : > { %3018 = vmatmul.mubr.msk.f32.gmra.mrb[44].mxu1 %vm489_vm0, %v1748_v28 }
 0x67e   : > { %3020 = vmatprep.mubr.msk.f32.mxu1 %vm489_vm0, %v1750_v29 }
 0x681   : > { %3021 = vmatmul.mubr.msk.f32.gmra.mrb[46].mxu1 %vm489_vm0, %v1752_v32 }
 0x6e9   : > { %v4657_v21 = vpop.f32.mrb[24].mxu1 }
 0x6ea   : > { %v4659_v41 = vpop.f32.mrb[25].mxu1 }
 0x6eb   : > { %v3516_v27 = vpack.i.bf16 %v4657_v21, %v4659_v41 }
 0x6f0   : > { %v4663_v24 = vpop.f32.mrb[26].mxu1 }
 0x6f1   : > { %v4665_v18 = vpop.f32.mrb[27].mxu1 }
 0x6f2   : > { %v3526_v38 = vpack.i.bf16 %v4663_v24, %v4665_v18 }
 0x71b   : > { %v4669_v30 = vpop.f32.mrb[28].mxu1 }
 0x71c   : > { %v4671_v7 = vpop.f32.mrb[29].mxu1 }
 0x71d   : > { %v3541_v13 = vpack.i.bf16 %v4669_v30, %v4671_v7 }
 0x724   : > { %v4675_v3 = vpop.f32.mrb[30].mxu1 }
 0x725   : > { %v4677_v36 = vpop.f32.mrb[31].mxu1 }
 0x726   : > { %v3556_v37 = vpack.i.bf16 %v4675_v3, %v4677_v36 }
 0x728   : > { %v4681_v19 = vpop.f32.mrb[32].mxu1 }
 0x729   : > { %v4683_v35 = vpop.f32.mrb[33].mxu1 }
 0x72a   : > { %v3521_v63 = vpack.i.bf16 %v4681_v19, %v4683_v35 }
 0x72c   : > { %v4687_v17 = vpop.f32.mrb[34].mxu1 }
 0x72d   : > { %v4689_v46 = vpop.f32.mrb[35].mxu1 }
 0x72e   : > { %v3531_v34 = vpack.i.bf16 %v4687_v17, %v4689_v46 }
 0x730   : > { %v4693_v50 = vpop.f32.mrb[36].mxu1 }
 0x731   : > { %v4695_v10 = vpop.f32.mrb[37].mxu1 }
 0x732   : > { %v3546_v42 = vpack.i.bf16 %v4693_v50, %v4695_v10 }
 0x734   : > { %v4699_v12 = vpop.f32.mrb[38].mxu1 }
 0x735   : > { %v4701_v49 = vpop.f32.mrb[39].mxu1 }
 0x736   : > { %v3566_v53 = vpack.i.bf16 %v4699_v12, %v4701_v49 }
 0x748   : > { %v3013_v56 = vpop.f32.mrb[40].mxu1 }
 0x749   : > { %v1907_v52 = vmul.f32 0.17677669, %v3013_v56  ;;  %v1867_v20 = vpop.f32.mrb[41].mxu1 }
 0x74a   : > { %v1906_v55 = vmul.f32 0.17677669, %v1867_v20 }
 0x74b   : > { %v1915_v31 = vsel %vm482_vm2, %v1907_v52, -inf }
 0x74c   : > { %v3016_v59 = vpop.f32.mrb[42].mxu1  ;;  %v1925_v8 = vsel %vm659_vm3, %v1915_v31, -inf  ;;  %v1914_v57 = vsel %vm481_vm4, %v1906_v55, -inf }
 0x74d   : > { %v1909_v11 = vmul.f32 0.17677669, %v3016_v59  ;;  %1926 = vmax.xlane.f32.xlu1 %v1925_v8  ;;  %v1877_v40 = vpop.f32.mrb[43].mxu1  ;;  %v1922_v14 = vsel %vm659_vm3, %v1914_v57, -inf }
 0x74e   : > { %v1908_v62 = vmul.f32 0.17677669, %v1877_v40  ;;  %1923 = vmax.xlane.f32.xlu0 %v1922_v14 }
 0x74f   : > { %v1917_v25 = vsel %vm484_vm5, %v1909_v11, -inf }
 0x750   : > { %v3019_v44 = vpop.f32.mrb[44].mxu1  ;;  %v1931_v15 = vsel %vm659_vm3, %v1917_v25, -inf  ;;  %v1916_v43 = vsel %vm483_vm6, %v1908_v62, -inf }
 0x751   : > { %v1911_v22 = vmul.f32 0.17677669, %v3019_v44  ;;  %v1887_v9 = vpop.f32.mrb[45].mxu1  ;;  %v1928_v29 = vsel %vm659_vm3, %v1916_v43, -inf }
 0x752   : > { %v1910_v23 = vmul.f32 0.17677669, %v1887_v9  ;;  %1932 = vmax.xlane.f32.xlu0 %v1931_v15 }
 0x753   : > { %v1919_v26 = vsel %vm486_vm8, %v1911_v22, -inf }
 0x754   : > { %v3022_v61 = vpop.f32.mrb[46].mxu1  ;;  %v1937_v5 = vsel %vm659_vm3, %v1919_v26, -inf  ;;  %v1918_v56 = vsel %vm485_vm7, %v1910_v23, -inf }
 0x755   : > { %v1913_v47 = vmul.f32 0.17677669, %v3022_v61  ;;  %1938 = vmax.xlane.f32.xlu1 %v1937_v5  ;;  %v1897_v28 = vpop.f32.mrb[47].mxu1  ;;  %v1934_v52 = vsel %vm659_vm3, %v1918_v56, -inf }
 0x756   : > { %v1912_v32 = vmul.f32 0.17677669, %v1897_v28  ;;  %1929 = vmax.xlane.f32.xlu0 %v1928_v29 }
 0x757   : > { %v1921_v51 = vsel %vm488_vm10, %v1913_v47, -inf }
 0x758   : > { %v1943_v60 = vsel %vm659_vm3, %v1921_v51, -inf  ;;  %v1920_v20 = vsel %vm487_vm9, %v1912_v32, -inf }
 0x759   : > { %1944 = vmax.xlane.f32.xlu1 %v1943_v60  ;;  %v1940_v55 = vsel %vm659_vm3, %v1920_v20, -inf }
 0x75a   : > { %1935 = vmax.xlane.f32.xlu0 %v1934_v52 }
 0x75e   : > { %1941 = vmax.xlane.f32.xlu0 %v1940_v55 }
 0x76a   : > { %3502 = vrot.lane.b32.xlu1 %v4176_v39, %s3771_s30 }
 0x774   : > { %3497 = vrot.lane.b32.xlu0 %v4174_v33, %s3771_s30 }
 0x7da   : > { %v1927_v58 = vpop.xlane.xlu1 %1926 }
 0x7db   : > { %v1947_v6 = vsub.f32 %v1915_v31, %v1927_v58  ;;  %v1924_v59 = vpop.xlane.xlu0 %1923 }
 0x7dc   : > { %v1946_v8 = vsub.f32 %v1914_v57, %v1924_v59 }
 0x7dd   : > { %v1956_v11 = vmul.f32 1.442695, %v1947_v6 }
 0x7de   : > { %v1954_v40 = vmul.f32 1.442695, %v1946_v8 }
 0x7df   : > { %3672 = vpow2.f32 %v1956_v11  ;;  %v1933_v14 = vpop.xlane.xlu0 %1932 }
 0x7e0   : > { %3674 = vpow2.f32 %v1954_v40  ;;  %v1949_v45 = vsub.f32 %v1917_v25, %v1933_v14 }
 0x7e2   : > { %v1960_v4 = vmul.f32 1.442695, %v1949_v45  ;;  %v1939_v62 = vpop.xlane.xlu1 %1938 }
 0x7e3   : > { %v1951_v44 = vsub.f32 %v1919_v26, %v1939_v62  ;;  %v1930_v15 = vpop.xlane.xlu0 %1929 }
 0x7e4   : > { %3676 = vpow2.f32 %v1960_v4  ;;  %v1948_v22 = vsub.f32 %v1916_v43, %v1930_v15 }
 0x7e5   : > { %v1964_v39 = vmul.f32 1.442695, %v1951_v44 }
 0x7e6   : > { %v1958_v9 = vmul.f32 1.442695, %v1948_v22  ;;  %v1945_v23 = vpop.xlane.xlu1 %1944 }
 0x7e7   : > { %3678 = vpow2.f32 %v1964_v39  ;;  %v1953_v33 = vsub.f32 %v1921_v51, %v1945_v23  ;;  %v1936_v31 = vpop.xlane.xlu0 %1935 }
 0x7e8   : > { %3680 = vpow2.f32 %v1958_v9  ;;  %v1950_v57 = vsub.f32 %v1918_v56, %v1936_v31 }
 0x7e9   : > { %v4741_v61 = vpop.eup %3672  ;;  %v1968_v5 = vmul.f32 1.442695, %v1953_v33 }
 0x7ea   : > { %v3675_v47 = vpop.eup %3674  ;;  %v1962_v28 = vmul.f32 1.442695, %v1950_v57  ;;  %v1973_v25 = vsel %vm659_vm3, %v4741_v61, 0.0  ;;  %v3503_v51 = vpop.permute.xlu1 %3502 }
 0x7eb   : > { %3682 = vpow2.f32 %v1968_v5  ;;  %1974 = vadd.xlane.f32.xlu1 %v1973_v25  ;;  %v1942_v26 = vpop.xlane.xlu0 %1941  ;;  %v1970_v43 = vsel %vm659_vm3, %v3675_v47, 0.0  ;;  %v3505_v59 = vunpack.i.h.bf16 %v3503_v51  ;;  %v3504_v8 = vunpack.i.l.bf16 %v3503_v51 }
 0x7ec   : > { %3684 = vpow2.f32 %v1962_v28  ;;  %v1952_v29 = vsub.f32 %v1920_v20, %v1942_v26  ;;  %1971 = vadd.xlane.f32.xlu0 %v1970_v43 }
 0x7ed   : > { %v3307_v4 = vpack.c.bf16 %v3505_v59, %v3504_v8  ;;  %v2288_v59 = vld [vmem:[%s4952_s2 + $0x20] sm:$0xff]  ;;  %v2289_v8 = vld [vmem:[%s4952_s2 + $0x28] sm:$0xff] }
 0x7ee   : > { %v4746_v32 = vpop.eup %3676  ;;  %v1966_v56 = vmul.f32 1.442695, %v1952_v29 }
 0x7ef   : > { %v3498_v60 = vpop.permute.xlu0 %3497  ;;  %v1979_v52 = vsel %vm659_vm3, %v4746_v32, 0.0 }
 0x7f0   : > { %3686 = vpow2.f32 %v1966_v56  ;;  %v3500_v55 = vunpack.i.h.bf16 %v3498_v60  ;;  %v3499_v58 = vunpack.i.l.bf16 %v3498_v60  ;;  %1980 = vadd.xlane.f32.xlu1 %v1979_v52  ;;  %v2285_v60 = vld [vmem:[%s4952_s2 + $0x8] sm:$0xff]  ;;  %v2286_v52 = vld [vmem:[%s4952_s2 + $0x10] sm:$0xff] }
 0x7f1   : > { %v4750_v6 = vpop.eup %3678 }
 0x7f2   : > { %v3681_v11 = vpop.eup %3680  ;;  %v3303_v40 = vpack.c.bf16 %v3500_v55, %v3499_v58  ;;  %v1985_v20 = vsel %vm659_vm3, %v4750_v6, 0.0  ;;  %v2287_v58 = vld [vmem:[%s4952_s2 + $0x18] sm:$0xff] }
 0x7f3   : > { %v1976_v14 = vsel %vm659_vm3, %v3681_v11, 0.0 }
 0x7f4   : > { %1986 = vadd.xlane.f32.xlu1 %v1985_v20  ;;  %1977 = vadd.xlane.f32.xlu0 %v1976_v14  ;;  %v2291_v20 = vld [vmem:[%s4952_s2 + $0x38] sm:$0xff] }
 0x7f5   : > { %v4755_v45 = vpop.eup %3682  ;;  %3304 = vmatprep.subr.bf16.mxu0 %v3303_v40 }
 0x7f6   : > { %v3685_v62 = vpop.eup %3684  ;;  %3306 = vmatpush3.bf16.msra.mxu0 %v3303_v40  ;;  %v1991_v44 = vsel %vm659_vm3, %v4755_v45, 0.0  ;;  %v2290_v40 = vld [vmem:[%s4952_s2 + $0x30] sm:$0xff] }
 0x7f7   : > { %3308 = vmatprep.subr.bf16.mxu0 %v3307_v4  ;;  %v1982_v15 = vsel %vm659_vm3, %v3685_v62, 0.0  ;;  %v3331_v14 = vpack.c.bf16 %v2291_v20, %v2290_v40 }
 0x7f8   : > { %1992 = vadd.xlane.f32.xlu1 %v1991_v44  ;;  %1983 = vadd.xlane.f32.xlu0 %v1982_v15  ;;  %v2294_v44 = vld [vmem:[%s4952_s2 + $0x50] sm:$0xff]  ;;  %v2295_v15 = vld [vmem:[%s4952_s2 + $0x58] sm:$0xff] }
 0x7fa   : > { %v3687_v22 = vpop.eup %3686  ;;  %3310 = vmatpush3.bf16.msra.mxu0 %v3307_v4  ;;  %v2293_v4 = vld [vmem:[%s4952_s2 + $0x48] sm:$0xff] }
 0x7fb   : > { %v1988_v39 = vsel %vm659_vm3, %v3687_v22, 0.0 }
 0x7fc   : > { %1989 = vadd.xlane.f32.xlu1 %v1988_v39  ;;  %v2296_v39 = vld [vmem:[%s4952_s2 + $0x60] sm:$0xff] }
 0x80d   : > { %3512 = vrot.lane.b32.xlu1 %v4182_v54, %s3771_s30 }
 0x80e   : > { %3507 = vrot.lane.b32.xlu0 %v4178_v48, %s3771_s30 }
 0x811   : > { %3522 = vrot.lane.b32.xlu1 %v3521_v63, %s3770_s29 }
 0x812   : > { %3517 = vrot.lane.b32.xlu0 %v3516_v27, %s3771_s30 }
 0x815   : > { %3527 = vrot.lane.b32.xlu1 %v3526_v38, %s3771_s30 }
 0x816   : > { %3532 = vrot.lane.b32.xlu0 %v3531_v34, %s3770_s29 }
 0x819   : > { %3547 = vrot.lane.b32.xlu1 %v3546_v42, %s3770_s29 }
 0x878   : > { %v1975_v48 = vpop.xlane.xlu1 %1974 }
 0x879   : > { %v1972_v54 = vpop.xlane.xlu0 %1971 }
 0x87a   : > { %3688 = vrcp.f32 %v1972_v54 }
 0x87b   : > { %3690 = vrcp.f32 %v1975_v48  ;;  %v2297_v48 = vld [vmem:[%s4952_s2 + $0x68] sm:$0xff] }
 0x87c   : > { %v3343_v54 = vpack.c.bf16 %v2297_v48, %v2296_v39 }
 0x87d   : > { %v1981_v21 = vpop.xlane.xlu1 %1980 }
 0x881   : > { %v1987_v41 = vpop.xlane.xlu1 %1986  ;;  %v1978_v27 = vpop.xlane.xlu0 %1977 }
 0x882   : > { %3692 = vrcp.f32 %v1978_v27 }
 0x883   : > { %3694 = vrcp.f32 %v1981_v21  ;;  %v2298_v21 = vld [vmem:[%s4952_s2 + $0x70] sm:$0xff] }
 0x884   : > { %v3689_v19 = vpop.eup %3688 }
 0x885   : > { %v1993_v35 = vpop.xlane.xlu1 %1992  ;;  %v1984_v24 = vpop.xlane.xlu0 %1983  ;;  %v2002_v18 = vmul.f32 %v3689_v19, %v3675_v47 }
 0x886   : > { %3696 = vrcp.f32 %v1984_v24  ;;  %v3691_v23 = vpop.eup %3690 }
 0x887   : > { %3039 = vmatprep.mubr.msk.f32.mxu0 %vm659_vm3, %v2002_v18  ;;  %3698 = vrcp.f32 %v1987_v41  ;;  %v2003_v31 = vmul.f32 %v3691_v23, %v4741_v61  ;;  %v2299_v41 = vld [vmem:[%s4952_s2 + $0x78] sm:$0xff] }
 0x888   : > { %v3347_v27 = vpack.c.bf16 %v2299_v41, %v2298_v21 }
 0x889   : > { %v1990_v38 = vpop.xlane.xlu1 %1989  ;;  %v3508_v63 = vpop.permute.xlu0 %3507 }
 0x88a   : > { %v3510_v17 = vunpack.i.h.bf16 %v3508_v63  ;;  %v3509_v46 = vunpack.i.l.bf16 %v3508_v63  ;;  %3700 = vrcp.f32 %v1990_v38 }
 0x88b   : > { %3702 = vrcp.f32 %v1993_v35 }
 0x88c   : > { %v3311_v34 = vpack.c.bf16 %v3510_v17, %v3509_v46  ;;  %v3693_v33 = vpop.eup %3692 }
 0x88d   : > { %v3513_v50 = vpop.permute.xlu1 %3512  ;;  %v3695_v57 = vpop.eup %3694  ;;  %v2004_v5 = vmul.f32 %v3693_v33, %v3681_v11  ;;  %v3327_v11 = vpack.c.bf16 %v2289_v8, %v2288_v59  ;;  %v4963_v8 = vld [vmem:[#allocation6_spill] sm:$0xff] }
 0x88e   : > { %v3515_v10 = vunpack.i.h.bf16 %v3513_v50  ;;  %v3514_v42 = vunpack.i.l.bf16 %v3513_v50  ;;  %3312 = vmatprep.subr.bf16.mxu0 %v3311_v34  ;;  %v2005_v28 = vmul.f32 %v3695_v57, %v4746_v32  ;;  %v2284_v32 = vld [vmem:[%s4952_s2] sm:$0xff]  ;;  %v3518_v7 = vpop.permute.xlu0 %3517 }
 0x88f   : > { %3314 = vmatpush3.bf16.msra.mxu0 %v3311_v34  ;;  %v3319_v55 = vpack.c.bf16 %v2285_v60, %v2284_v32  ;;  %v3520_v23 = vunpack.i.h.bf16 %v3518_v7  ;;  %v3519_v33 = vunpack.i.l.bf16 %v3518_v7 }
 0x890   : > { %v3315_v9 = vpack.c.bf16 %v3515_v10, %v3514_v42  ;;  %v3697_v47 = vpop.eup %3696 }
 0x891   : > { %v3699_v25 = vpop.eup %3698  ;;  %v2006_v26 = vmul.f32 %v3697_v47, %v3685_v62  ;;  %v3523_v30 = vpop.permute.xlu1 %3522  ;;  %v2260_v47 = vsel %vm489_vm0, %v4338_v16, %v3520_v23 }
 0x892   : > { %3316 = vmatprep.subr.bf16.mxu0 %v3315_v9  ;;  %v2007_v29 = vmul.f32 %v3699_v25, %v4750_v6  ;;  %v3323_v6 = vpack.c.bf16 %v2287_v58, %v2286_v52  ;;  %v3525_v3 = vunpack.i.h.bf16 %v3523_v30  ;;  %v3524_v36 = vunpack.i.l.bf16 %v3523_v30  ;;  %v2599_v30 = vld [vmem:[%s4953_s3] ss:$0 sm:$0xff] }
 0x893   : > { %3318 = vmatpush3.bf16.msra.mxu0 %v3315_v9  ;;  %v3533_v9 = vpop.permute.xlu0 %3532 }
 0x894   : > { %v3701_v43 = vpop.eup %3700  ;;  %3320 = vmatprep.subr.bf16.mxu0 %v3319_v55  ;;  %v3535_v16 = vunpack.i.h.bf16 %v3533_v9 }
 0x895   : > { %v3703_v51 = vpop.eup %3702  ;;  %v2008_v61 = vmul.f32 %v3701_v43, %v3687_v22  ;;  %v3339_v22 = vpack.c.bf16 %v2295_v15, %v2294_v44 }
 0x896   : > { %3040 = vmatmul.mubr.msk.f32.vlgmr.msra.gmra.mrb[32].mxu0 %vm659_vm3, %v2003_v31  ;;  %v2009_v56 = vmul.f32 %v3703_v51, %v4755_v45  ;;  %v2292_v45 = vld [vmem:[%s4952_s2 + $0x40] sm:$0xff] }
 0x897   : > { %3042 = vmatprep.mubr.msk.f32.mxu0 %vm659_vm3, %v2004_v5  ;;  %3322 = vmatpush3.bf16.msra.mxu0 %v3319_v55  ;;  %v3335_v62 = vpack.c.bf16 %v2293_v4, %v2292_v45 }
 0x898   : > { %3324 = vmatprep.subr.bf16.mxu0 %v3323_v6 }
 0x89a   : > { %3043 = vmatmul.mubr.msk.f32.gmra.mrb[34].mxu0 %vm659_vm3, %v2005_v28  ;;  %v2268_v28 = vsel %vm659_vm3, %v2260_v47, %v3525_v3 }
 0x89b   : > { %3045 = vmatprep.mubr.msk.f32.mxu0 %vm659_vm3, %v2006_v26  ;;  %3326 = vmatpush3.bf16.msra.mxu0 %v3323_v6 }
 0x89c   : > { %3328 = vmatprep.subr.bf16.mxu0 %v3327_v11 }
 0x89e   : > { %3046 = vmatmul.mubr.msk.f32.gmra.mrb[36].mxu0 %vm659_vm3, %v2007_v29 }
 0x89f   : > { %3048 = vmatprep.mubr.msk.f32.mxu0 %vm659_vm3, %v2008_v61  ;;  %3330 = vmatpush3.bf16.msra.mxu0 %v3327_v11  ;;  %v3534_v61 = vunpack.i.l.bf16 %v3533_v9  ;;  %v4964_v11 = vld [vmem:[#allocation5_spill] sm:$0xff] }
 0x8a0   : > { %3332 = vmatprep.subr.bf16.mxu0 %v3331_v14 }
 0x8a2   : > { %3049 = vmatmul.mubr.msk.f32.gmra.mrb[38].mxu0 %vm659_vm3, %v2009_v56 }
 0x8a3   : > { %3334 = vmatpush3.bf16.msra.mxu0 %v3331_v14 }
 0x8a4   : > { %3336 = vmatprep.subr.bf16.mxu0 %v3335_v62 }
 0x8a7   : > { %3338 = vmatpush3.bf16.msra.mxu0 %v3335_v62 }
 0x8a8   : > { %3340 = vmatprep.subr.bf16.mxu0 %v3339_v22 }
 0x8ab   : > { %3342 = vmatpush3.bf16.msra.mxu0 %v3339_v22 }
 0x8ac   : > { %3344 = vmatprep.subr.bf16.mxu0 %v3343_v54 }
 0x8af   : > { %3346 = vmatpush3.bf16.msra.mxu0 %v3343_v54 }
 0x8b0   : > { %3348 = vmatprep.subr.bf16.mxu0 %v3347_v27 }
 0x8b3   : > { %3350 = vmatpush3.bf16.msra.mxu0 %v3347_v27 }
 0x969   : > { %v3041_v19 = vpop.f32.mrb[32].mxu0 }
 0x96a   : > { %v2124_v35 = vpop.f32.mrb[33].mxu0 }
 0x96b   : > { %v3536_v24 = vpack.i.bf16 %v3041_v19, %v2124_v35 }
 0x96d   : > { %3537 = vrot.lane.b32.xlu0 %v3536_v24, %s3769_s28  ;;  %v3044_v18 = vpop.f32.mrb[34].mxu0 }
 0x96e   : > { %v2134_v38 = vpop.f32.mrb[35].mxu0 }
 0x96f   : > { %v3551_v63 = vpack.i.bf16 %v3044_v18, %v2134_v38  ;;  %v4965_v38 = vld [vmem:[#allocation8_spill] sm:$0xff] }
 0x971   : > { %3542 = vrot.lane.b32.xlu0 %v3541_v13, %s3771_s30  ;;  %3552 = vrot.lane.b32.xlu1 %v3551_v63, %s3769_s28  ;;  %v3047_v17 = vpop.f32.mrb[36].mxu0  ;;  %v3528_v13 = vpop.permute.xlu1 %3527 }
 0x972   : > { %v2144_v46 = vpop.f32.mrb[37].mxu0  ;;  %v3529_v31 = vunpack.i.l.bf16 %v3528_v13 }
 0x973   : > { %v3561_v34 = vpack.i.bf16 %v3047_v17, %v2144_v46  ;;  %v4966_v17 = vld [vmem:[#allocation7_spill] sm:$0xff] }
 0x974   : > { %v2261_v29 = vsel %vm489_vm0, %v4344_v2, %v3529_v31 }
 0x975   : > { %3557 = vrot.lane.b32.xlu1 %v3556_v37, %s3771_s30  ;;  %3562 = vrot.lane.b32.xlu0 %v3561_v34, %s3769_s28  ;;  %v3050_v50 = vpop.f32.mrb[38].mxu0  ;;  %v3530_v37 = vunpack.i.h.bf16 %v3528_v13  ;;  %v3548_v57 = vpop.permute.xlu1 %3547  ;;  %v2269_v58 = vsel %vm659_vm3, %v2261_v29, %v3534_v61 }
 0x976   : > { %v2154_v10 = vpop.f32.mrb[39].mxu0  ;;  %v3550_v20 = vunpack.i.h.bf16 %v3548_v57  ;;  %v3549_v14 = vunpack.i.l.bf16 %v3548_v57 }
 0x977   : > { %v3571_v42 = vpack.i.bf16 %v3050_v50, %v2154_v10  ;;  %v2262_v51 = vsel %vm489_vm0, %v4342_v1, %v3530_v37 }
 0x978   : > { %v2270_v6 = vsel %vm659_vm3, %v2262_v51, %v3535_v16 }
 0x979   : > { %3567 = vrot.lane.b32.xlu0 %v3566_v53, %s3770_s29  ;;  %3572 = vrot.lane.b32.xlu1 %v3571_v42, %s3769_s28  ;;  %v2259_v53 = vsel %vm489_vm0, %v4340_v0, %v3519_v33  ;;  %s188_s28 = sand.u32 1, %s3758_s16  }
 0x97a   : > { %v2267_v25 = vsel %vm659_vm3, %v2259_v53, %v3524_v36  ;;  %s2500_s29 = sshll.u32 %s188_s28, 6  ;;  %s4909_s19 = scalar_lea.sflag [#allocation3], %s188_s28 }
 0x97b   : > { %s190_s10 = scalar_lea.vmem [#allocation2], %s2500_s29 }
 0x97c   : > { %s2434_s22 = sshll.u32 %s190_s10, 4  ;;  %s4905_s22 = int_to_ptr.vmem [resolvable:$true] %s2434_s22 }
 0x97d   : > { %s3704_s20 = scalar_lea.vmem %s4905_s22, 1024  ;;  %p3711_p0 = scmp.lt.s32.totalorder %s4905_s22, %s3709_s27 }
 0x97e   : > { %p3705_p11 = scmp.ne.s32.totalorder %s4905_s22, %s3704_s20  ;;  %p3712_p1 = scmp.lt.s32.totalorder %s3710_s6, %s3704_s20 }
 0x980   : > { %p3706_p12 = pnand %p3705_p11, %p3838_p5  ;;  %p3713_p2 = por %p3712_p1, %p3711_p0 }
 0x982   : > { %p3707_p13 = pneg %p3706_p12 }
 0x984   : > { %p3714_p3 = pnand %p3713_p2, %p3707_p13 }
 0x9df   : > { %v3538_v5 = vpop.permute.xlu0 %3537 }
 0x9e0   : > { %v3540_v12 = vunpack.i.h.bf16 %v3538_v5  ;;  %v3539_v49 = vunpack.i.l.bf16 %v3538_v5 }
 0x9e2   : > { %v2276_v26 = vsel %vm2275_vm11, %v2267_v25, %v3539_v49  ;;  %v2277_v43 = vsel %vm2275_vm11, %v2268_v28, %v3540_v12 }
 0x9e3   : > { %v3543_v56 = vpop.permute.xlu0 %3542  ;;  %3083 = vmatprep.mubr.f32.mxu0 %v2276_v26  ;;  %v3553_v32 = vpop.permute.xlu1 %3552 }
 0x9e4   : > { %v3545_v0 = vunpack.i.h.bf16 %v3543_v56  ;;  %v3544_v60 = vunpack.i.l.bf16 %v3543_v56  ;;  %v3555_v52 = vunpack.i.h.bf16 %v3553_v32  ;;  %v3554_v55 = vunpack.i.l.bf16 %v3553_v32  ;;  %3084 = vmatmul.mubr.f32.vlgmr.msra.gmra.mrb[40].mxu0 %v2277_v43 }
 0x9e6   : > { %v2278_v59 = vsel %vm2275_vm11, %v2269_v58, %v3554_v55  ;;  %v2279_v2 = vsel %vm2275_vm11, %v2270_v6, %v3555_v52  ;;  %v2263_v1 = vsel %vm489_vm0, %v4963_v8, %v3544_v60  ;;  %v2264_v40 = vsel %vm489_vm0, %v4964_v11, %v3545_v0 }
 0x9e7   : > { %v3558_v45 = vpop.permute.xlu1 %3557  ;;  %3086 = vmatprep.mubr.f32.mxu0 %v2278_v59  ;;  %v3563_v4 = vpop.permute.xlu0 %3562  ;;  %v2271_v39 = vsel %vm659_vm3, %v2263_v1, %v3549_v14  ;;  %v2272_v48 = vsel %vm659_vm3, %v2264_v40, %v3550_v20 }
 0x9e8   : > { %v3565_v62 = vunpack.i.h.bf16 %v3563_v4  ;;  %v3564_v44 = vunpack.i.l.bf16 %v3563_v4  ;;  %3087 = vmatmul.mubr.f32.gmra.mrb[42].mxu0 %v2279_v2  ;;  %v3560_v15 = vunpack.i.h.bf16 %v3558_v45  ;;  %v3559_v22 = vunpack.i.l.bf16 %v3558_v45 }
 0x9ea   : > { %v2280_v54 = vsel %vm2275_vm11, %v2271_v39, %v3564_v44  ;;  %v2281_v21 = vsel %vm2275_vm11, %v2272_v48, %v3565_v62  ;;  %v2265_v63 = vsel %vm489_vm0, %v4965_v38, %v3559_v22  ;;  %v2266_v46 = vsel %vm489_vm0, %v4966_v17, %v3560_v15 }
 0x9eb   : > { %v3568_v41 = vpop.permute.xlu0 %3567  ;;  %3089 = vmatprep.mubr.f32.mxu0 %v2280_v54  ;;  %v3573_v27 = vpop.permute.xlu1 %3572 }
 0x9ec   : > { %v3570_v19 = vunpack.i.h.bf16 %v3568_v41  ;;  %v3569_v35 = vunpack.i.l.bf16 %v3568_v41  ;;  %v3575_v24 = vunpack.i.h.bf16 %v3573_v27  ;;  %v3574_v18 = vunpack.i.l.bf16 %v3573_v27  ;;  %3090 = vmatmul.mubr.f32.gmra.mrb[44].mxu0 %v2281_v21 }
 0x9ee   : > { %v2273_v34 = vsel %vm659_vm3, %v2265_v63, %v3569_v35  ;;  %v2274_v50 = vsel %vm659_vm3, %v2266_v46, %v3570_v19 }
 0x9ef   : > { %v2282_v10 = vsel %vm2275_vm11, %v2273_v34, %v3574_v18  ;;  %v2283_v42 = vsel %vm2275_vm11, %v2274_v50, %v3575_v24 }
 0x9f0   : > { %3092 = vmatprep.mubr.f32.mxu0 %v2282_v10 }
 0x9f1   : > { %3093 = vmatmul.mubr.f32.gmra.mrb[46].mxu0 %v2283_v42 }
 0xab7   : > { %v3085_v7 = vpop.f32.mrb[40].mxu0 }
 0xab8   : > { %v2379_v13 = vadd.f32 %v3085_v7, %v2599_v30  ;;  %v2373_v9 = vpop.f32.mrb[41].mxu0 }
 0xab9   : > { %v2374_v23 = vadd.f32 %v2599_v30, %v2373_v9 }
 0xaba   : > { %2413 = vst [vmem:[%s190_s10 + $0x8] sm:$0xff] %v2379_v13 }
 0xabb   : > { %2412 = vst [vmem:[%s190_s10] sm:$0xff] %v2374_v23  ;;  %v3088_v33 = vpop.f32.mrb[42].mxu0 }
 0xabc   : > { %v2389_v3 = vadd.f32 %v3088_v33, %v2599_v30  ;;  %v2383_v36 = vpop.f32.mrb[43].mxu0 }
 0xabd   : > { %v2384_v37 = vadd.f32 %v2599_v30, %v2383_v36 }
 0xabe   : > { %2415 = vst [vmem:[%s190_s10 + $0x18] sm:$0xff] %v2389_v3 }
 0xabf   : > { %2414 = vst [vmem:[%s190_s10 + $0x10] sm:$0xff] %v2384_v37  ;;  %v3091_v31 = vpop.f32.mrb[44].mxu0 }
 0xac0   : > { %v2399_v57 = vadd.f32 %v3091_v31, %v2599_v30  ;;  %v2393_v5 = vpop.f32.mrb[45].mxu0 }
 0xac1   : > { %v2394_v47 = vadd.f32 %v2599_v30, %v2393_v5 }
 0xac2   : > { %2417 = vst [vmem:[%s190_s10 + $0x28] sm:$0xff] %v2399_v57 }
 0xac3   : > { %2416 = vst [vmem:[%s190_s10 + $0x20] sm:$0xff] %v2394_v47 }
 0xac4   : > { %v3094_v12 = vpop.f32.mrb[46].mxu0 }
 0xac5   : > { %v2409_v49 = vadd.f32 %v3094_v12, %v2599_v30  ;;  %v2403_v53 = vpop.f32.mrb[47].mxu0 }
 0xac6   : > { %v2404_v28 = vadd.f32 %v2599_v30, %v2403_v53 }
 0xac7   : > { %2419 = vst [vmem:[%s190_s10 + $0x38] sm:$0xff] %v2409_v49 }
 0xac8   : > { %2418 = vst [vmem:[%s190_s10 + $0x30] sm:$0xff] %v2404_v28 }
 0xac9   : > { %3717 = shalt.err (!%p3714_p3)
}
 0xaca   : > { %s3718_s7 = scalar_lea.hbm %s4903_s14, 1024  ;;  %s3722_s28 = scalar_lea.hbm %s4954_s4, 2048 }
 0xacb   : > { %p3719_p4 = scmp.ne.s32.totalorder %s4903_s14, %s3718_s7  ;;  %p3723_p9 = scmp.lt.u32.totalorder %s4903_s14, %s4954_s4 }
 0xacc   : > { %p3724_p10 = scmp.lt.u32.totalorder %s3722_s28, %s3718_s7  ;;  %p3726_p12 = scmp.lt.u32.totalorder %s3718_s7, %s4903_s14 }
 0xacd   : > { %p3720_p7 = pnand %p3719_p4, %p3838_p5 }
 0xace   : > { %p3725_p11 = por %p3724_p10, %p3723_p9 }
 0xacf   : > { %p3721_p8 = pneg %p3720_p7 }
 0xad0   : > { %p3727_p13 = por %p3726_p12, %p3725_p11 }
 0xad2   : > { %p3728_p0 = pnand %p3727_p13, %p3721_p8 }
 0xad4   : > { %3731 = shalt.err (!%p3728_p0)
}
 0xad5   : > { %s3773_s9 = smov 128   ;;  %s3774_s10 = smov 8  }
 0xad6   : > { %3351 = dma.vmem_to_hbm [thread:$0]  (%p3838_p5), %s4905_s22, 1024, %s4903_s14, %s4909_s19, %s3773_s9, %s3773_s9, %s3774_s10  }
 0xad7 PF: > { %p3357_p1 = scmp.ge.s32.totalorder %s3766_s18, 2  ;;  %s2449_s11 = sand.u32 1, %s3754_s15  }
 0xad8   : > { %s2450_s12 = scalar_lea.sflag [#allocation3], %s2449_s11 }
 0xad9   : > { %p3354_p2 = pnand %p3357_p1, %p3842_p6 }
 0xadb   : > { %3749 = dma.done.wait (!%p3354_p2), %s2450_s12, 1024  }
 0xadc   : > { %3751 = vsyncadd (!%p3354_p2), %s2450_s12, 4294966272  ;;  %p14_p3 = scmp.ge.s32.totalorder %s3825_s21, 4   ;;  %s4967_s15 = smov %s3758_s16 }
 0xadd   : > { %s4968_s16 = smov %s3762_s17  ;;  %s4969_s17 = smov %s3836_s24 }
 0xade   : > { %s4970_s18 = smov %s3825_s21  ;;  %16 = sbr.rel (!%p14_p3) target bundleno = 3 (0x3), region = 71 }
 0xae5   :  { %2455 = vsyncpa [#allocation3], 1 }
 0xae6   :  { %2457 = vsyncpa [#allocation3 + $0x1], 1 }

</bundles_post_ra>
